<compile_context>
chip_gen: v7x
topology: tpu7x:2x2x1
jax: 0.10.0
libtpu: 0.0.40
codegen_flags: <defaults>
</compile_context>

<pallas_src>
import functools

import jax
import jax.numpy as jnp
from jax.experimental import pallas as pl
from jax.experimental.pallas import tpu as pltpu

_LANE = 128                      # output channels padded to lane width
_VMEM_LIMIT = 32 * 1024 * 1024   # explicit scoped-VMEM budget (safe on v5e/v6e/v7x)
_BN_EPS = 1e-5


def _round_up(x, m):
    return (x + m - 1) // m * m


def _choose_tm(m_rows, kp, cp):
    """Largest M-tile (multiple of 8, <=512) whose double-buffered working set
    (bf16 patches + bf16 weights + f32 output) fits a conservative VMEM budget
    sized against v7x's 64 MiB physical VMEM."""
    budget = 20 * 1024 * 1024
    fixed = 2 * kp * cp * 2                 # double-buffered bf16 weight tile
    per_row = 2 * (kp * 2 + cp * 4)         # double-buffered bf16 patches + f32 out
    tm = (budget - fixed) // per_row
    tm = max(8, min(512, (tm // 8) * 8))
    return min(tm, _round_up(m_rows, 8))


# ---------------------------------------------------------------------------
# Pallas kernels
# ---------------------------------------------------------------------------
def _apply_act(y, act):
    if act == "relu":
        return jnp.maximum(y, 0.0)
    if act == "leaky":
        return jnp.where(y > 0, y, 0.2 * y)
    if act == "tanh":
        return jnp.tanh(y)
    return y


def _matmul_act_kernel(x_ref, w_ref, o_ref, *, act):
    # x: (TM, Kp) bf16, w: (Kp, Cp) bf16 -> o: (TM, Cp) f32 (lane-dense Cp % 128 == 0)
    y = jnp.dot(x_ref[...], w_ref[...], preferred_element_type=jnp.float32)
    o_ref[...] = _apply_act(y, act)


def _matmul_stats_kernel(x_ref, w_ref, y_ref, stats_ref):
    # Matmul tile + BatchNorm statistics. stats_ref is a resident (8, Cp)
    # accumulator (same block every grid step; M axis is "arbitrary"):
    # row 0 accumulates sum(y), row 1 accumulates sum(y*y).
    y = jnp.dot(x_ref[...], w_ref[...], preferred_element_type=jnp.float32)
    y_ref[...] = y

    @pl.when(pl.program_id(0) == 0)
    def _init():
        stats_ref[...] = jnp.zeros_like(stats_ref)

    cp = stats_ref.shape[1]
    s = jnp.sum(y, axis=0, keepdims=True)
    ss = jnp.sum(y * y, axis=0, keepdims=True)
    rows = jax.lax.broadcasted_iota(jnp.int32, (8, cp), 0)
    part = jnp.where(rows == 0, s, 0.0) + jnp.where(rows == 1, ss, 0.0)
    stats_ref[...] = stats_ref[...] + part


def _bn_act_kernel(y_ref, scale_ref, shift_ref, o_ref, *, act):
    # y: (TM, Cp) f32; scale/shift: (1, Cp) f32 (precomputed gamma*rstd / beta-mean*scale)
    y = y_ref[...] * scale_ref[...] + shift_ref[...]
    o_ref[...] = _apply_act(y, act)


# ---------------------------------------------------------------------------
# Pallas wrappers (tiling, padding, compiler params)
# ---------------------------------------------------------------------------
def _pad_operands(patches, wmat):
    M, K = patches.shape
    Cout = wmat.shape[1]
    Cp = _round_up(Cout, _LANE)     # lane-dense output channels
    Kp = _round_up(K, _LANE)        # keep MXU reduction dim aligned (zeros are exact)
    tm = _choose_tm(M, Kp, Cp)
    Mp = _round_up(max(M, tm), tm)
    x = jnp.pad(patches.astype(jnp.bfloat16), ((0, Mp - M), (0, Kp - K)))
    w = jnp.pad(wmat.astype(jnp.bfloat16), ((0, Kp - K), (0, Cp - Cout)))
    return x, w, tm, Mp, Kp, Cp


def _pallas_matmul_act(patches, wmat, act):
    """Fused im2col-matmul + activation (layers without BatchNorm)."""
    M, _ = patches.shape
    Cout = wmat.shape[1]
    x, w, tm, Mp, Kp, Cp = _pad_operands(patches, wmat)
    kernel = functools.partial(_matmul_act_kernel, act=act)
    y = pl.pallas_call(
        kernel,
        grid=(Mp // tm,),
        out_shape=jax.ShapeDtypeStruct((Mp, Cp), jnp.float32),
        in_specs=[
            pl.BlockSpec((tm, Kp), lambda i: (i, 0)),
            pl.BlockSpec((Kp, Cp), lambda i: (0, 0)),
        ],
        out_specs=pl.BlockSpec((tm, Cp), lambda i: (i, 0)),
        compiler_params=pltpu.CompilerParams(
            dimension_semantics=("parallel",),          # megacore-shard M on v7x
            vmem_limit_bytes=_VMEM_LIMIT),
        cost_estimate=pl.CostEstimate(
            flops=2 * Mp * Kp * Cp,
            transcendentals=Mp * Cp if act == "tanh" else 0,
            bytes_accessed=x.size * 2 + w.size * 2 + Mp * Cp * 4),
    )(x, w)
    return y[:M, :Cout]


def _pallas_matmul_stats(patches, wmat):
    """M-tiled matmul that also accumulates per-channel sum / sumsq for BN."""
    M, _ = patches.shape
    Cout = wmat.shape[1]
    x, w, tm, Mp, Kp, Cp = _pad_operands(patches, wmat)
    y, stats = pl.pallas_call(
        _matmul_stats_kernel,
        grid=(Mp // tm,),
        out_shape=(jax.ShapeDtypeStruct((Mp, Cp), jnp.float32),
                   jax.ShapeDtypeStruct((8, Cp), jnp.float32)),
        in_specs=[
            pl.BlockSpec((tm, Kp), lambda i: (i, 0)),
            pl.BlockSpec((Kp, Cp), lambda i: (0, 0)),
        ],
        out_specs=(pl.BlockSpec((tm, Cp), lambda i: (i, 0)),
                   pl.BlockSpec((8, Cp), lambda i: (0, 0))),
        compiler_params=pltpu.CompilerParams(
            dimension_semantics=("arbitrary",),         # stats accumulate across M
            vmem_limit_bytes=_VMEM_LIMIT),
        cost_estimate=pl.CostEstimate(
            flops=2 * Mp * Kp * Cp,
            transcendentals=0,
            bytes_accessed=x.size * 2 + w.size * 2 + Mp * Cp * 4),
    )(x, w)
    return y[:M], stats[0], stats[1], Cp


def _pallas_bn_act(y, scale, shift, act):
    """Elementwise BatchNorm affine + activation, tiled over rows."""
    M, Cp = y.shape
    tm = min(512, _round_up(M, 8))
    Mp = _round_up(max(M, tm), tm)
    yp = jnp.pad(y, ((0, Mp - M), (0, 0)))
    kernel = functools.partial(_bn_act_kernel, act=act)
    out = pl.pallas_call(
        kernel,
        grid=(Mp // tm,),
        out_shape=jax.ShapeDtypeStruct((Mp, Cp), jnp.float32),
        in_specs=[
            pl.BlockSpec((tm, Cp), lambda i: (i, 0)),
            pl.BlockSpec((1, Cp), lambda i: (0, 0)),
            pl.BlockSpec((1, Cp), lambda i: (0, 0)),
        ],
        out_specs=pl.BlockSpec((tm, Cp), lambda i: (i, 0)),
        compiler_params=pltpu.CompilerParams(
            dimension_semantics=("parallel",),
            vmem_limit_bytes=_VMEM_LIMIT),
    )(yp, scale.reshape(1, Cp), shift.reshape(1, Cp))
    return out[:M]


def _bn_scale_shift(total, total_sq, count, gamma, beta, cp):
    # Training-mode BatchNorm: biased batch statistics over the full output.
    mean = total / count
    var = jnp.maximum(total_sq / count - mean * mean, 0.0)
    rstd = jax.lax.rsqrt(var + _BN_EPS)
    g = jnp.pad(gamma.astype(jnp.float32), (0, cp - gamma.shape[0]))
    b = jnp.pad(beta.astype(jnp.float32), (0, cp - beta.shape[0]))
    scale = g * rstd
    shift = b - mean * scale
    return scale, shift


# ---------------------------------------------------------------------------
# Plain-JAX glue: NHWC im2col, conv / conv-transpose rewrites
# ---------------------------------------------------------------------------
def _im2col_nhwc(xp, kh, kw, stride, Ho, Wo):
    # TODO(synk): extract patches inside the kernel (kh*kw reduction grid axis or
    # manual DMA gather) to avoid materializing the kh*kw-replicated im2col in HBM.
    N, _, _, Cin = xp.shape
    cols = []
    for i in range(kh):
        for j in range(kw):
            cols.append(xp[:, i:i + stride * Ho:stride, j:j + stride * Wo:stride, :])
    patches = jnp.stack(cols, axis=3)                    # (N, Ho, Wo, kh*kw, Cin)
    return patches.reshape(N * Ho * Wo, kh * kw * Cin)


def _conv2d(x, w, stride, pad, bn, act):
    """Standard conv: NHWC activations, PyTorch OIHW weight (Cout, Cin, kh, kw)."""
    N, H, W, Cin = x.shape
    Cout, _, kh, kw = w.shape
    Ho = (H + 2 * pad - kh) // stride + 1
    Wo = (W + 2 * pad - kw) // stride + 1
    xp = jnp.pad(x, ((0, 0), (pad, pad), (pad, pad), (0, 0)))
    patches = _im2col_nhwc(xp, kh, kw, stride, Ho, Wo)              # (M, kh*kw*Cin)
    wmat = jnp.transpose(w, (2, 3, 1, 0)).reshape(kh * kw * Cin, Cout)
    if bn is None:
        y = _pallas_matmul_act(patches, wmat, act)                  # (M, Cout)
        return y.reshape(N, Ho, Wo, Cout)
    y, s, ss, cp = _pallas_matmul_stats(patches, wmat)              # (M, cp)
    scale, shift = _bn_scale_shift(s, ss, patches.shape[0], bn[0], bn[1], cp)
    y = _pallas_bn_act(y, scale, shift, act)
    return y[:, :Cout].reshape(N, Ho, Wo, Cout)


def _conv_transpose2d_s1(x, w, pad, bn, act):
    # stride-1 ConvTranspose == stride-1 conv of the (k-1-pad)-padded input with
    # the flipped, channel-swapped kernel. Only used on the tiny 1x1 -> 4x4 decoder
    # head (launch-overhead bound), so the generic path is fine.
    kh = w.shape[2]
    w_conv = jnp.transpose(jnp.flip(w, (2, 3)), (1, 0, 2, 3))       # (Cout, Cin, kh, kw)
    return _conv2d(x, w_conv, 1, kh - 1 - pad, bn, act)


def _conv_transpose2d_s2(x, w, bn, act):
    """stride-2 / pad-1 / 4x4 ConvTranspose decomposed into 4 stride-1 sub-convs
    (one per output parity class): no structural zeros are multiplied.
       out[2m]   = x[m-1]*W[i=3] + x[m]*W[i=1]
       out[2m+1] = x[m]  *W[i=2] + x[m+1]*W[i=0]   (same pattern along columns)"""
    N, H, W, Cin = x.shape
    Cout = w.shape[1]                                   # w: (Cin, Cout, 4, 4)
    cp = _round_up(Cout, _LANE)
    taps = {0: (3, 1), 1: (2, 0)}
    out_c = Cout if bn is None else cp
    y_full = jnp.zeros((N, 2 * H, 2 * W, out_c), jnp.float32)
    tot_s = jnp.zeros((cp,), jnp.float32)
    tot_ss = jnp.zeros((cp,), jnp.float32)
    for pe in (0, 1):
        for qe in (0, 1):
            pad_r = (1, 0) if pe == 0 else (0, 1)
            pad_c = (1, 0) if qe == 0 else (0, 1)
            xp = jnp.pad(x, ((0, 0), pad_r, pad_c, (0, 0)))
            patches = _im2col_nhwc(xp, 2, 2, 1, H, W)               # (N*H*W, 4*Cin)
            r0, r1 = taps[pe]
            c0, c1 = taps[qe]
            w_rc = jnp.stack(
                [jnp.stack([w[:, :, r0, c0], w[:, :, r0, c1]], axis=-1),
                 jnp.stack([w[:, :, r1, c0], w[:, :, r1, c1]], axis=-1)],
                axis=-2)                                            # (Cin, Cout, 2, 2)
            wmat = jnp.transpose(w_rc, (2, 3, 0, 1)).reshape(4 * Cin, Cout)
            if bn is None:
                yc = _pallas_matmul_act(patches, wmat, act)         # (M, Cout)
                y_full = y_full.at[:, pe::2, qe::2, :].set(yc.reshape(N, H, W, Cout))
            else:
                yc, s, ss, _ = _pallas_matmul_stats(patches, wmat)  # (M, cp)
                y_full = y_full.at[:, pe::2, qe::2, :].set(yc.reshape(N, H, W, cp))
                tot_s = tot_s + s
                tot_ss = tot_ss + ss
    if bn is None:
        return y_full
    count = N * 2 * H * 2 * W                      # BN stats over the full output
    scale, shift = _bn_scale_shift(tot_s, tot_ss, count, bn[0], bn[1], cp)
    y = _pallas_bn_act(y_full.reshape(count, cp), scale, shift, act)
    return y[:, :Cout].reshape(N, 2 * H, 2 * W, Cout)


def _apply_encoder_layer(x, layer):
    return _conv2d(x, layer["w"], layer["stride"], layer["pad"], layer["bn"], layer["act"])


def _apply_decoder_layer(x, layer):
    if layer["stride"] == 1:
        return _conv_transpose2d_s1(x, layer["w"], layer["pad"], layer["bn"], layer["act"])
    assert layer["stride"] == 2 and layer["pad"] == 1 and layer["w"].shape[2] == 4
    return _conv_transpose2d_s2(x, layer["w"], layer["bn"], layer["act"])


# ---------------------------------------------------------------------------
# Deterministic parameter construction mirroring Encoder/Decoder __init__
# ---------------------------------------------------------------------------
def init_params(isize, nc, nz, ndf, ngf, key):
    assert isize % 16 == 0, "image size has to be a multiple of 16"
    keys = iter(jax.random.split(key, 64))

    def w_init(shape):
        return 0.02 * jax.random.normal(next(keys), shape, jnp.float32)

    def bn_init(c):
        gamma = 1.0 + 0.02 * jax.random.normal(next(keys), (c,), jnp.float32)
        beta = jnp.zeros((c,), jnp.float32)
        return (gamma, beta)

    # --- Encoder ---
    enc = []
    enc.append(dict(w=w_init((ndf, nc, 4, 4)), stride=2, pad=1,
                    bn=None, act="leaky"))
    csize, cndf = isize // 2, ndf
    while csize > 4:
        out_feat = cndf * 2
        enc.append(dict(w=w_init((out_feat, cndf, 4, 4)), stride=2, pad=1,
                        bn=bn_init(out_feat), act="leaky"))
        cndf = out_feat
        csize //= 2
    enc.append(dict(w=w_init((nz, cndf, 4, 4)), stride=1, pad=0,
                    bn=None, act="none"))

    # --- Decoder ---  (ConvTranspose weights in PyTorch (Cin, Cout, kh, kw) layout)
    cngf, tisize = ngf // 2, 4
    while tisize != isize:
        cngf *= 2
        tisize *= 2
    dec = []
    dec.append(dict(w=w_init((nz, cngf, 4, 4)), stride=1, pad=0,
                    bn=bn_init(cngf), act="relu"))
    csize = 4
    while csize < isize // 2:
        dec.append(dict(w=w_init((cngf, cngf // 2, 4, 4)), stride=2, pad=1,
                        bn=bn_init(cngf // 2), act="relu"))
        cngf //= 2
        csize *= 2
    dec.append(dict(w=w_init((cngf, nc, 4, 4)), stride=2, pad=1,
                    bn=None, act="tanh"))
    return enc, dec


# ---------------------------------------------------------------------------
# Discriminator forward: f_enc = Encoder(x), f_dec = Decoder(f_enc), flatten
# ---------------------------------------------------------------------------
def discriminator_forward(x_nchw, enc_layers, dec_layers):
    n = x_nchw.shape[0]
    h = jnp.transpose(x_nchw, (0, 2, 3, 1)).astype(jnp.float32)   # NHWC end-to-end
    for layer in enc_layers:
        h = _apply_encoder_layer(h, layer)
    f_enc = h                                                     # (N, 1, 1, nz)
    g = f_enc
    for layer in dec_layers:
        g = _apply_decoder_layer(g, layer)                        # (N, isize, isize, nc)
    f_enc_flat = f_enc.reshape(n, -1)                 # spatial is 1x1: same as NCHW view
    f_dec_flat = jnp.transpose(g, (0, 3, 1, 2)).reshape(n, -1)    # PyTorch NCHW flatten
    return f_enc_flat, f_dec_flat


# ---------------------------------------------------------------------------
# Pure-JAX f32 reference (lax convs) for correctness
# ---------------------------------------------------------------------------
def _reference_forward(x, enc_layers, dec_layers):
    hi = jax.lax.Precision.HIGHEST

    def bn(y, gamma, beta):
        mean = y.mean(axis=(0, 2, 3), keepdims=True)
        var = ((y - mean) ** 2).mean(axis=(0, 2, 3), keepdims=True)
        return ((y - mean) * jax.lax.rsqrt(var + _BN_EPS) * gamma.reshape(1, -1, 1, 1)
                + beta.reshape(1, -1, 1, 1))

    h = x
    for L in enc_layers:
        h = jax.lax.conv_general_dilated(
            h, L["w"], (L["stride"],) * 2, [(L["pad"], L["pad"])] * 2, precision=hi)
        if L["bn"] is not None:
            h = bn(h, *L["bn"])
        h = _apply_act(h, L["act"])
    f_enc = h
    g = f_enc
    for L in dec_layers:
        k = L["w"].shape[2]
        p = k - 1 - L["pad"]
        w_conv = jnp.transpose(jnp.flip(L["w"], (2, 3)), (1, 0, 2, 3))
        g = jax.lax.conv_general_dilated(
            g, w_conv, (1, 1), [(p, p)] * 2, lhs_dilation=(L["stride"],) * 2, precision=hi)
        if L["bn"] is not None:
            g = bn(g, *L["bn"])
        g = _apply_act(g, L["act"])
    n = x.shape[0]
    return f_enc.reshape(n, -1), g.reshape(n, -1)


if __name__ == "__main__":
    isize, nc, nz, ndf, ngf, batch = 16, 4, 32, 16, 16, 2
    key = jax.random.PRNGKey(0)
    kx, kp = jax.random.split(key)
    x = jax.random.normal(kx, (batch, nc, isize, isize), jnp.float32)

    enc_layers, dec_layers = init_params(isize, nc, nz, ndf, ngf, kp)

    fwd = jax.jit(lambda img: discriminator_forward(img, enc_layers, dec_layers))
    f_enc, f_dec = fwd(x)
    jax.block_until_ready((f_enc, f_dec))

    assert f_enc.shape == (batch, nz), f_enc.shape
    assert f_dec.shape == (batch, nc * isize * isize), f_dec.shape
    assert bool(jnp.all(jnp.isfinite(f_enc))) and bool(jnp.all(jnp.isfinite(f_dec)))

    # Cross-check against a pure-JAX f32 reference (bf16 MXU inputs -> ~1e-2 drift).
    r_enc, r_dec = jax.jit(lambda img: _reference_forward(img, enc_layers, dec_layers))(x)
    err_enc = float(jnp.max(jnp.abs(f_enc - r_enc)))
    err_dec = float(jnp.max(jnp.abs(f_dec - r_dec)))
    assert err_enc < 0.15 and err_dec < 0.15, (err_enc, err_dec)

    print("KERNEL_OK")
</pallas_src>

<mosaic_0001>
module attributes {stable_mosaic.version = 11 : i64} {
  func.func @_matmul_act_kernel(%arg0: i32, %arg1: memref<128x128xbf16, #tpu.memory_space<vmem>>, %arg2: memref<128x128xbf16, #tpu.memory_space<vmem>>, %arg3: memref<128x128xf32, #tpu.memory_space<vmem>>) attributes {dimension_semantics = [#tpu.dimension_semantics<parallel>], iteration_bounds = array<i64: 1>, scalar_prefetch = 0 : i64, scratch_operands = 0 : i64, tpu.core_type = #tpu.core_type<tc>, window_params = [{transform_indices = @transform_0, window_bounds = array<i64: 128, 128>}, {pipeline_mode = #tpu.pipeline_mode<synchronous>, transform_indices = @transform_1, window_bounds = array<i64: 128, 128>}, {transform_indices = @transform_2, window_bounds = array<i64: 128, 128>}]} {
    %c0 = arith.constant 0 : index
    %c0_0 = arith.constant 0 : index
    %0 = vector.load %arg1[%c0, %c0_0] : memref<128x128xbf16, #tpu.memory_space<vmem>>, vector<128x128xbf16>
    %c0_1 = arith.constant 0 : index
    %c0_2 = arith.constant 0 : index
    %1 = vector.load %arg2[%c0_1, %c0_2] : memref<128x128xbf16, #tpu.memory_space<vmem>>, vector<128x128xbf16>
    %cst = arith.constant dense<0.000000e+00> : vector<128x128xf32>
    %2 = tpu.matmul %0, %1, %cst {dimension_numbers = #tpu.dot_dimension_numbers<[1], [0], [0], [1], [0, 0, 1, 1], [], []>} : vector<128x128xbf16>, vector<128x128xbf16>, vector<128x128xf32> -> vector<128x128xf32>
    %cst_3 = arith.constant 0.000000e+00 : f32
    %3 = vector.broadcast %cst_3 : f32 to vector<128x128xf32>
    %4 = arith.cmpf ogt, %2, %3 : vector<128x128xf32>
    %cst_4 = arith.constant 2.000000e-01 : f32
    %5 = vector.broadcast %cst_4 : f32 to vector<128x128xf32>
    %6 = arith.mulf %5, %2 : vector<128x128xf32>
    %7 = arith.select %4, %2, %6 : vector<128x128xi1>, vector<128x128xf32>
    %c0_5 = arith.constant 0 : index
    %c0_6 = arith.constant 0 : index
    %8 = vector.load %arg3[%c0_5, %c0_6] : memref<128x128xf32, #tpu.memory_space<vmem>>, vector<128x128xf32>
    tpu.vector_store %arg3[%c0_5, %c0_6], %7 {strides = array<i32>} : memref<128x128xf32, #tpu.memory_space<vmem>>, vector<128x128xf32>,
    return
  }
  func.func @transform_0(%arg0: i32) -> (i32, i32) {
    %c0_i32 = arith.constant 0 : i32
    %c0_i32_0 = arith.constant 0 : i32
    return %arg0, %c0_i32 : i32, i32
  }
  func.func @transform_1(%arg0: i32) -> (i32, i32) {
    %c0_i32 = arith.constant 0 : i32
    %c0_i32_0 = arith.constant 0 : i32
    %c0_i32_1 = arith.constant 0 : i32
    return %c0_i32, %c0_i32_0 : i32, i32
  }
  func.func @transform_2(%arg0: i32) -> (i32, i32) {
    %c0_i32 = arith.constant 0 : i32
    %c0_i32_0 = arith.constant 0 : i32
    return %arg0, %c0_i32 : i32, i32
  }
}

module attributes {stable_mosaic.version = 11 : i64} {
  func.func @_bn_act_kernel(%arg0: i32, %arg1: memref<32x128xf32, #tpu.memory_space<vmem>>, %arg2: memref<1x128xf32, #tpu.memory_space<vmem>>, %arg3: memref<1x128xf32, #tpu.memory_space<vmem>>, %arg4: memref<32x128xf32, #tpu.memory_space<vmem>>) attributes {dimension_semantics = [#tpu.dimension_semantics<parallel>], iteration_bounds = array<i64: 1>, scalar_prefetch = 0 : i64, scratch_operands = 0 : i64, tpu.core_type = #tpu.core_type<tc>, window_params = [{transform_indices = @transform_0, window_bounds = array<i64: 32, 128>}, {pipeline_mode = #tpu.pipeline_mode<synchronous>, transform_indices = @transform_1, window_bounds = array<i64: 1, 128>}, {pipeline_mode = #tpu.pipeline_mode<synchronous>, transform_indices = @transform_2, window_bounds = array<i64: 1, 128>}, {transform_indices = @transform_3, window_bounds = array<i64: 32, 128>}]} {
    %c0 = arith.constant 0 : index
    %c0_0 = arith.constant 0 : index
    %0 = vector.load %arg1[%c0, %c0_0] : memref<32x128xf32, #tpu.memory_space<vmem>>, vector<32x128xf32>
    %c0_1 = arith.constant 0 : index
    %c0_2 = arith.constant 0 : index
    %1 = vector.load %arg2[%c0_1, %c0_2] : memref<1x128xf32, #tpu.memory_space<vmem>>, vector<1x128xf32>
    %2 = vector.broadcast %1 : vector<1x128xf32> to vector<32x128xf32>
    %3 = arith.mulf %0, %2 : vector<32x128xf32>
    %c0_3 = arith.constant 0 : index
    %c0_4 = arith.constant 0 : index
    %4 = vector.load %arg3[%c0_3, %c0_4] : memref<1x128xf32, #tpu.memory_space<vmem>>, vector<1x128xf32>
    %5 = vector.broadcast %4 : vector<1x128xf32> to vector<32x128xf32>
    %6 = arith.addf %3, %5 : vector<32x128xf32>
    %cst = arith.constant 0.000000e+00 : f32
    %7 = vector.broadcast %cst : f32 to vector<32x128xf32>
    %8 = arith.cmpf ogt, %6, %7 : vector<32x128xf32>
    %cst_5 = arith.constant 2.000000e-01 : f32
    %9 = vector.broadcast %cst_5 : f32 to vector<32x128xf32>
    %10 = arith.mulf %9, %6 : vector<32x128xf32>
    %11 = arith.select %8, %6, %10 : vector<32x128xi1>, vector<32x128xf32>
    %c0_6 = arith.constant 0 : index
    %c0_7 = arith.constant 0 : index
    %12 = vector.load %arg4[%c0_6, %c0_7] : memref<32x128xf32, #tpu.memory_space<vmem>>, vector<32x128xf32>
    tpu.vector_store %arg4[%c0_6, %c0_7], %11 {strides = array<i32>} : memref<32x128xf32, #tpu.memory_space<vmem>>, vector<32x128xf32>,
    return
  }
  func.func @transform_0(%arg0: i32) -> (i32, i32) {
    %c0_i32 = arith.constant 0 : i32
    %c0_i32_0 = arith.constant 0 : i32
    return %arg0, %c0_i32 : i32, i32
  }
  func.func @transform_1(%arg0: i32) -> (i32, i32) {
    %c0_i32 = arith.constant 0 : i32
    %c0_i32_0 = arith.constant 0 : i32
    %c0_i32_1 = arith.constant 0 : i32
    return %c0_i32, %c0_i32_0 : i32, i32
  }
  func.func @transform_2(%arg0: i32) -> (i32, i32) {
    %c0_i32 = arith.constant 0 : i32
    %c0_i32_0 = arith.constant 0 : i32
    %c0_i32_1 = arith.constant 0 : i32
    return %c0_i32, %c0_i32_0 : i32, i32
  }
  func.func @transform_3(%arg0: i32) -> (i32, i32) {
    %c0_i32 = arith.constant 0 : i32
    %c0_i32_0 = arith.constant 0 : i32
    return %arg0, %c0_i32 : i32, i32
  }
}

module attributes {stable_mosaic.version = 11 : i64} {
  func.func @_matmul_stats_kernel(%arg0: i32, %arg1: memref<32x256xbf16, #tpu.memory_space<vmem>>, %arg2: memref<256x128xbf16, #tpu.memory_space<vmem>>, %arg3: memref<32x128xf32, #tpu.memory_space<vmem>>, %arg4: memref<8x128xf32, #tpu.memory_space<vmem>>) attributes {dimension_semantics = [#tpu.dimension_semantics<arbitrary>], iteration_bounds = array<i64: 1>, scalar_prefetch = 0 : i64, scratch_operands = 0 : i64, tpu.core_type = #tpu.core_type<tc>, window_params = [{transform_indices = @transform_0, window_bounds = array<i64: 32, 256>}, {pipeline_mode = #tpu.pipeline_mode<synchronous>, transform_indices = @transform_1, window_bounds = array<i64: 256, 128>}, {transform_indices = @transform_2, window_bounds = array<i64: 32, 128>}, {pipeline_mode = #tpu.pipeline_mode<synchronous>, transform_indices = @transform_3, window_bounds = array<i64: 8, 128>}]} {
    %c0 = arith.constant 0 : index
    %c0_0 = arith.constant 0 : index
    %0 = vector.load %arg1[%c0, %c0_0] : memref<32x256xbf16, #tpu.memory_space<vmem>>, vector<32x256xbf16>
    %c0_1 = arith.constant 0 : index
    %c0_2 = arith.constant 0 : index
    %1 = vector.load %arg2[%c0_1, %c0_2] : memref<256x128xbf16, #tpu.memory_space<vmem>>, vector<256x128xbf16>
    %cst = arith.constant dense<0.000000e+00> : vector<32x128xf32>
    %2 = tpu.matmul %0, %1, %cst {dimension_numbers = #tpu.dot_dimension_numbers<[1], [0], [0], [1], [0, 0, 1, 1], [], []>} : vector<32x256xbf16>, vector<256x128xbf16>, vector<32x128xf32> -> vector<32x128xf32>
    %c0_3 = arith.constant 0 : index
    %c0_4 = arith.constant 0 : index
    %3 = vector.load %arg3[%c0_3, %c0_4] : memref<32x128xf32, #tpu.memory_space<vmem>>, vector<32x128xf32>
    tpu.vector_store %arg3[%c0_3, %c0_4], %2 {strides = array<i32>} : memref<32x128xf32, #tpu.memory_space<vmem>>, vector<32x128xf32>,
    %c0_i32 = arith.constant 0 : i32
    %4 = arith.cmpi eq, %arg0, %c0_i32 : i32
    %5 = arith.extui %4 : i1 to i32
    %c0_i32_5 = arith.constant 0 : i32
    %6 = arith.cmpi ne, %5, %c0_i32_5 : i32
    scf.if %6 {
      %cst_15 = arith.constant 0.000000e+00 : f32
      %29 = vector.broadcast %cst_15 : f32 to vector<8x128xf32>
      %c0_16 = arith.constant 0 : index
      %c0_17 = arith.constant 0 : index
      %30 = vector.load %arg4[%c0_16, %c0_17] : memref<8x128xf32, #tpu.memory_space<vmem>>, vector<8x128xf32>
      tpu.vector_store %arg4[%c0_16, %c0_17], %29 {strides = array<i32>} : memref<8x128xf32, #tpu.memory_space<vmem>>, vector<8x128xf32>,
    } else {
    }
    %cst_6 = arith.constant dense<0.000000e+00> : vector<128xf32>
    %7 = vector.multi_reduction <add>, %2, %cst_6 [0] : vector<32x128xf32> to vector<128xf32>
    %8 = vector.shape_cast %7 : vector<128xf32> to vector<1x128xf32>
    %9 = arith.mulf %2, %2 : vector<32x128xf32>
    %cst_7 = arith.constant dense<0.000000e+00> : vector<128xf32>
    %10 = vector.multi_reduction <add>, %9, %cst_7 [0] : vector<32x128xf32> to vector<128xf32>
    %11 = vector.shape_cast %10 : vector<128xf32> to vector<1x128xf32>
    %12 = tpu.iota {dimensions = array<i32: 0>} : vector<8x128xi32>
    %c0_i32_8 = arith.constant 0 : i32
    %13 = vector.broadcast %c0_i32_8 : i32 to vector<8x128xi32>
    %14 = arith.cmpi eq, %12, %13 : vector<8x128xi32>
    %cst_9 = arith.constant 0.000000e+00 : f32
    %15 = vector.shape_cast %8 : vector<1x128xf32> to vector<1x128xf32>
    %16 = vector.broadcast %15 : vector<1x128xf32> to vector<8x128xf32>
    %17 = vector.broadcast %cst_9 : f32 to vector<8x128xf32>
    %18 = arith.select %14, %16, %17 : vector<8x128xi1>, vector<8x128xf32>
    %c1_i32 = arith.constant 1 : i32
    %19 = vector.broadcast %c1_i32 : i32 to vector<8x128xi32>
    %20 = arith.cmpi eq, %12, %19 : vector<8x128xi32>
    %cst_10 = arith.constant 0.000000e+00 : f32
    %21 = vector.shape_cast %11 : vector<1x128xf32> to vector<1x128xf32>
    %22 = vector.broadcast %21 : vector<1x128xf32> to vector<8x128xf32>
    %23 = vector.broadcast %cst_10 : f32 to vector<8x128xf32>
    %24 = arith.select %20, %22, %23 : vector<8x128xi1>, vector<8x128xf32>
    %25 = arith.addf %18, %24 : vector<8x128xf32>
    %c0_11 = arith.constant 0 : index
    %c0_12 = arith.constant 0 : index
    %26 = vector.load %arg4[%c0_11, %c0_12] : memref<8x128xf32, #tpu.memory_space<vmem>>, vector<8x128xf32>
    %27 = arith.addf %26, %25 : vector<8x128xf32>
    %c0_13 = arith.constant 0 : index
    %c0_14 = arith.constant 0 : index
    %28 = vector.load %arg4[%c0_13, %c0_14] : memref<8x128xf32, #tpu.memory_space<vmem>>, vector<8x128xf32>
    tpu.vector_store %arg4[%c0_13, %c0_14], %27 {strides = array<i32>} : memref<8x128xf32, #tpu.memory_space<vmem>>, vector<8x128xf32>,
    return
  }
  func.func @transform_0(%arg0: i32) -> (i32, i32) {
    %c0_i32 = arith.constant 0 : i32
    %c0_i32_0 = arith.constant 0 : i32
    return %arg0, %c0_i32 : i32, i32
  }
  func.func @transform_1(%arg0: i32) -> (i32, i32) {
    %c0_i32 = arith.constant 0 : i32
    %c0_i32_0 = arith.constant 0 : i32
    %c0_i32_1 = arith.constant 0 : i32
    return %c0_i32, %c0_i32_0 : i32, i32
  }
  func.func @transform_2(%arg0: i32) -> (i32, i32) {
    %c0_i32 = arith.constant 0 : i32
    %c0_i32_0 = arith.constant 0 : i32
    return %arg0, %c0_i32 : i32, i32
  }
  func.func @transform_3(%arg0: i32) -> (i32, i32) {
    %c0_i32 = arith.constant 0 : i32
    %c0_i32_0 = arith.constant 0 : i32
    %c0_i32_1 = arith.constant 0 : i32
    return %c0_i32, %c0_i32_0 : i32, i32
  }
}

module attributes {stable_mosaic.version = 11 : i64} {
  func.func @_matmul_act_kernel(%arg0: i32, %arg1: memref<8x512xbf16, #tpu.memory_space<vmem>>, %arg2: memref<512x128xbf16, #tpu.memory_space<vmem>>, %arg3: memref<8x128xf32, #tpu.memory_space<vmem>>) attributes {dimension_semantics = [#tpu.dimension_semantics<parallel>], iteration_bounds = array<i64: 1>, scalar_prefetch = 0 : i64, scratch_operands = 0 : i64, tpu.core_type = #tpu.core_type<tc>, window_params = [{transform_indices = @transform_0, window_bounds = array<i64: 8, 512>}, {pipeline_mode = #tpu.pipeline_mode<synchronous>, transform_indices = @transform_1, window_bounds = array<i64: 512, 128>}, {transform_indices = @transform_2, window_bounds = array<i64: 8, 128>}]} {
    %c0 = arith.constant 0 : index
    %c0_0 = arith.constant 0 : index
    %0 = vector.load %arg1[%c0, %c0_0] : memref<8x512xbf16, #tpu.memory_space<vmem>>, vector<8x512xbf16>
    %c0_1 = arith.constant 0 : index
    %c0_2 = arith.constant 0 : index
    %1 = vector.load %arg2[%c0_1, %c0_2] : memref<512x128xbf16, #tpu.memory_space<vmem>>, vector<512x128xbf16>
    %cst = arith.constant dense<0.000000e+00> : vector<8x128xf32>
    %2 = tpu.matmul %0, %1, %cst {dimension_numbers = #tpu.dot_dimension_numbers<[1], [0], [0], [1], [0, 0, 1, 1], [], []>} : vector<8x512xbf16>, vector<512x128xbf16>, vector<8x128xf32> -> vector<8x128xf32>
    %c0_3 = arith.constant 0 : index
    %c0_4 = arith.constant 0 : index
    %3 = vector.load %arg3[%c0_3, %c0_4] : memref<8x128xf32, #tpu.memory_space<vmem>>, vector<8x128xf32>
    tpu.vector_store %arg3[%c0_3, %c0_4], %2 {strides = array<i32>} : memref<8x128xf32, #tpu.memory_space<vmem>>, vector<8x128xf32>,
    return
  }
  func.func @transform_0(%arg0: i32) -> (i32, i32) {
    %c0_i32 = arith.constant 0 : i32
    %c0_i32_0 = arith.constant 0 : i32
    return %arg0, %c0_i32 : i32, i32
  }
  func.func @transform_1(%arg0: i32) -> (i32, i32) {
    %c0_i32 = arith.constant 0 : i32
    %c0_i32_0 = arith.constant 0 : i32
    %c0_i32_1 = arith.constant 0 : i32
    return %c0_i32, %c0_i32_0 : i32, i32
  }
  func.func @transform_2(%arg0: i32) -> (i32, i32) {
    %c0_i32 = arith.constant 0 : i32
    %c0_i32_0 = arith.constant 0 : i32
    return %arg0, %c0_i32 : i32, i32
  }
}

module attributes {stable_mosaic.version = 11 : i64} {
  func.func @_matmul_stats_kernel(%arg0: i32, %arg1: memref<32x512xbf16, #tpu.memory_space<vmem>>, %arg2: memref<512x128xbf16, #tpu.memory_space<vmem>>, %arg3: memref<32x128xf32, #tpu.memory_space<vmem>>, %arg4: memref<8x128xf32, #tpu.memory_space<vmem>>) attributes {dimension_semantics = [#tpu.dimension_semantics<arbitrary>], iteration_bounds = array<i64: 1>, scalar_prefetch = 0 : i64, scratch_operands = 0 : i64, tpu.core_type = #tpu.core_type<tc>, window_params = [{transform_indices = @transform_0, window_bounds = array<i64: 32, 512>}, {pipeline_mode = #tpu.pipeline_mode<synchronous>, transform_indices = @transform_1, window_bounds = array<i64: 512, 128>}, {transform_indices = @transform_2, window_bounds = array<i64: 32, 128>}, {pipeline_mode = #tpu.pipeline_mode<synchronous>, transform_indices = @transform_3, window_bounds = array<i64: 8, 128>}]} {
    %c0 = arith.constant 0 : index
    %c0_0 = arith.constant 0 : index
    %0 = vector.load %arg1[%c0, %c0_0] : memref<32x512xbf16, #tpu.memory_space<vmem>>, vector<32x512xbf16>
    %c0_1 = arith.constant 0 : index
    %c0_2 = arith.constant 0 : index
    %1 = vector.load %arg2[%c0_1, %c0_2] : memref<512x128xbf16, #tpu.memory_space<vmem>>, vector<512x128xbf16>
    %cst = arith.constant dense<0.000000e+00> : vector<32x128xf32>
    %2 = tpu.matmul %0, %1, %cst {dimension_numbers = #tpu.dot_dimension_numbers<[1], [0], [0], [1], [0, 0, 1, 1], [], []>} : vector<32x512xbf16>, vector<512x128xbf16>, vector<32x128xf32> -> vector<32x128xf32>
    %c0_3 = arith.constant 0 : index
    %c0_4 = arith.constant 0 : index
    %3 = vector.load %arg3[%c0_3, %c0_4] : memref<32x128xf32, #tpu.memory_space<vmem>>, vector<32x128xf32>
    tpu.vector_store %arg3[%c0_3, %c0_4], %2 {strides = array<i32>} : memref<32x128xf32, #tpu.memory_space<vmem>>, vector<32x128xf32>,
    %c0_i32 = arith.constant 0 : i32
    %4 = arith.cmpi eq, %arg0, %c0_i32 : i32
    %5 = arith.extui %4 : i1 to i32
    %c0_i32_5 = arith.constant 0 : i32
    %6 = arith.cmpi ne, %5, %c0_i32_5 : i32
    scf.if %6 {
      %cst_15 = arith.constant 0.000000e+00 : f32
      %29 = vector.broadcast %cst_15 : f32 to vector<8x128xf32>
      %c0_16 = arith.constant 0 : index
      %c0_17 = arith.constant 0 : index
      %30 = vector.load %arg4[%c0_16, %c0_17] : memref<8x128xf32, #tpu.memory_space<vmem>>, vector<8x128xf32>
      tpu.vector_store %arg4[%c0_16, %c0_17], %29 {strides = array<i32>} : memref<8x128xf32, #tpu.memory_space<vmem>>, vector<8x128xf32>,
    } else {
    }
    %cst_6 = arith.constant dense<0.000000e+00> : vector<128xf32>
    %7 = vector.multi_reduction <add>, %2, %cst_6 [0] : vector<32x128xf32> to vector<128xf32>
    %8 = vector.shape_cast %7 : vector<128xf32> to vector<1x128xf32>
    %9 = arith.mulf %2, %2 : vector<32x128xf32>
    %cst_7 = arith.constant dense<0.000000e+00> : vector<128xf32>
    %10 = vector.multi_reduction <add>, %9, %cst_7 [0] : vector<32x128xf32> to vector<128xf32>
    %11 = vector.shape_cast %10 : vector<128xf32> to vector<1x128xf32>
    %12 = tpu.iota {dimensions = array<i32: 0>} : vector<8x128xi32>
    %c0_i32_8 = arith.constant 0 : i32
    %13 = vector.broadcast %c0_i32_8 : i32 to vector<8x128xi32>
    %14 = arith.cmpi eq, %12, %13 : vector<8x128xi32>
    %cst_9 = arith.constant 0.000000e+00 : f32
    %15 = vector.shape_cast %8 : vector<1x128xf32> to vector<1x128xf32>
    %16 = vector.broadcast %15 : vector<1x128xf32> to vector<8x128xf32>
    %17 = vector.broadcast %cst_9 : f32 to vector<8x128xf32>
    %18 = arith.select %14, %16, %17 : vector<8x128xi1>, vector<8x128xf32>
    %c1_i32 = arith.constant 1 : i32
    %19 = vector.broadcast %c1_i32 : i32 to vector<8x128xi32>
    %20 = arith.cmpi eq, %12, %19 : vector<8x128xi32>
    %cst_10 = arith.constant 0.000000e+00 : f32
    %21 = vector.shape_cast %11 : vector<1x128xf32> to vector<1x128xf32>
    %22 = vector.broadcast %21 : vector<1x128xf32> to vector<8x128xf32>
    %23 = vector.broadcast %cst_10 : f32 to vector<8x128xf32>
    %24 = arith.select %20, %22, %23 : vector<8x128xi1>, vector<8x128xf32>
    %25 = arith.addf %18, %24 : vector<8x128xf32>
    %c0_11 = arith.constant 0 : index
    %c0_12 = arith.constant 0 : index
    %26 = vector.load %arg4[%c0_11, %c0_12] : memref<8x128xf32, #tpu.memory_space<vmem>>, vector<8x128xf32>
    %27 = arith.addf %26, %25 : vector<8x128xf32>
    %c0_13 = arith.constant 0 : index
    %c0_14 = arith.constant 0 : index
    %28 = vector.load %arg4[%c0_13, %c0_14] : memref<8x128xf32, #tpu.memory_space<vmem>>, vector<8x128xf32>
    tpu.vector_store %arg4[%c0_13, %c0_14], %27 {strides = array<i32>} : memref<8x128xf32, #tpu.memory_space<vmem>>, vector<8x128xf32>,
    return
  }
  func.func @transform_0(%arg0: i32) -> (i32, i32) {
    %c0_i32 = arith.constant 0 : i32
    %c0_i32_0 = arith.constant 0 : i32
    return %arg0, %c0_i32 : i32, i32
  }
  func.func @transform_1(%arg0: i32) -> (i32, i32) {
    %c0_i32 = arith.constant 0 : i32
    %c0_i32_0 = arith.constant 0 : i32
    %c0_i32_1 = arith.constant 0 : i32
    return %c0_i32, %c0_i32_0 : i32, i32
  }
  func.func @transform_2(%arg0: i32) -> (i32, i32) {
    %c0_i32 = arith.constant 0 : i32
    %c0_i32_0 = arith.constant 0 : i32
    return %arg0, %c0_i32 : i32, i32
  }
  func.func @transform_3(%arg0: i32) -> (i32, i32) {
    %c0_i32 = arith.constant 0 : i32
    %c0_i32_0 = arith.constant 0 : i32
    %c0_i32_1 = arith.constant 0 : i32
    return %c0_i32, %c0_i32_0 : i32, i32
  }
}

module attributes {stable_mosaic.version = 11 : i64} {
  func.func @_bn_act_kernel(%arg0: i32, %arg1: memref<32x128xf32, #tpu.memory_space<vmem>>, %arg2: memref<1x128xf32, #tpu.memory_space<vmem>>, %arg3: memref<1x128xf32, #tpu.memory_space<vmem>>, %arg4: memref<32x128xf32, #tpu.memory_space<vmem>>) attributes {dimension_semantics = [#tpu.dimension_semantics<parallel>], iteration_bounds = array<i64: 1>, scalar_prefetch = 0 : i64, scratch_operands = 0 : i64, tpu.core_type = #tpu.core_type<tc>, window_params = [{transform_indices = @transform_0, window_bounds = array<i64: 32, 128>}, {pipeline_mode = #tpu.pipeline_mode<synchronous>, transform_indices = @transform_1, window_bounds = array<i64: 1, 128>}, {pipeline_mode = #tpu.pipeline_mode<synchronous>, transform_indices = @transform_2, window_bounds = array<i64: 1, 128>}, {transform_indices = @transform_3, window_bounds = array<i64: 32, 128>}]} {
    %c0 = arith.constant 0 : index
    %c0_0 = arith.constant 0 : index
    %0 = vector.load %arg1[%c0, %c0_0] : memref<32x128xf32, #tpu.memory_space<vmem>>, vector<32x128xf32>
    %c0_1 = arith.constant 0 : index
    %c0_2 = arith.constant 0 : index
    %1 = vector.load %arg2[%c0_1, %c0_2] : memref<1x128xf32, #tpu.memory_space<vmem>>, vector<1x128xf32>
    %2 = vector.broadcast %1 : vector<1x128xf32> to vector<32x128xf32>
    %3 = arith.mulf %0, %2 : vector<32x128xf32>
    %c0_3 = arith.constant 0 : index
    %c0_4 = arith.constant 0 : index
    %4 = vector.load %arg3[%c0_3, %c0_4] : memref<1x128xf32, #tpu.memory_space<vmem>>, vector<1x128xf32>
    %5 = vector.broadcast %4 : vector<1x128xf32> to vector<32x128xf32>
    %6 = arith.addf %3, %5 : vector<32x128xf32>
    %cst = arith.constant 0.000000e+00 : f32
    %7 = vector.broadcast %cst : f32 to vector<32x128xf32>
    %8 = arith.maximumf %6, %7 : vector<32x128xf32>
    %c0_5 = arith.constant 0 : index
    %c0_6 = arith.constant 0 : index
    %9 = vector.load %arg4[%c0_5, %c0_6] : memref<32x128xf32, #tpu.memory_space<vmem>>, vector<32x128xf32>
    tpu.vector_store %arg4[%c0_5, %c0_6], %8 {strides = array<i32>} : memref<32x128xf32, #tpu.memory_space<vmem>>, vector<32x128xf32>,
    return
  }
  func.func @transform_0(%arg0: i32) -> (i32, i32) {
    %c0_i32 = arith.constant 0 : i32
    %c0_i32_0 = arith.constant 0 : i32
    return %arg0, %c0_i32 : i32, i32
  }
  func.func @transform_1(%arg0: i32) -> (i32, i32) {
    %c0_i32 = arith.constant 0 : i32
    %c0_i32_0 = arith.constant 0 : i32
    %c0_i32_1 = arith.constant 0 : i32
    return %c0_i32, %c0_i32_0 : i32, i32
  }
  func.func @transform_2(%arg0: i32) -> (i32, i32) {
    %c0_i32 = arith.constant 0 : i32
    %c0_i32_0 = arith.constant 0 : i32
    %c0_i32_1 = arith.constant 0 : i32
    return %c0_i32, %c0_i32_0 : i32, i32
  }
  func.func @transform_3(%arg0: i32) -> (i32, i32) {
    %c0_i32 = arith.constant 0 : i32
    %c0_i32_0 = arith.constant 0 : i32
    return %arg0, %c0_i32 : i32, i32
  }
}

module attributes {stable_mosaic.version = 11 : i64} {
  func.func @_matmul_stats_kernel(%arg0: i32, %arg1: memref<32x128xbf16, #tpu.memory_space<vmem>>, %arg2: memref<128x128xbf16, #tpu.memory_space<vmem>>, %arg3: memref<32x128xf32, #tpu.memory_space<vmem>>, %arg4: memref<8x128xf32, #tpu.memory_space<vmem>>) attributes {dimension_semantics = [#tpu.dimension_semantics<arbitrary>], iteration_bounds = array<i64: 1>, scalar_prefetch = 0 : i64, scratch_operands = 0 : i64, tpu.core_type = #tpu.core_type<tc>, window_params = [{transform_indices = @transform_0, window_bounds = array<i64: 32, 128>}, {pipeline_mode = #tpu.pipeline_mode<synchronous>, transform_indices = @transform_1, window_bounds = array<i64: 128, 128>}, {transform_indices = @transform_2, window_bounds = array<i64: 32, 128>}, {pipeline_mode = #tpu.pipeline_mode<synchronous>, transform_indices = @transform_3, window_bounds = array<i64: 8, 128>}]} {
    %c0 = arith.constant 0 : index
    %c0_0 = arith.constant 0 : index
    %0 = vector.load %arg1[%c0, %c0_0] : memref<32x128xbf16, #tpu.memory_space<vmem>>, vector<32x128xbf16>
    %c0_1 = arith.constant 0 : index
    %c0_2 = arith.constant 0 : index
    %1 = vector.load %arg2[%c0_1, %c0_2] : memref<128x128xbf16, #tpu.memory_space<vmem>>, vector<128x128xbf16>
    %cst = arith.constant dense<0.000000e+00> : vector<32x128xf32>
    %2 = tpu.matmul %0, %1, %cst {dimension_numbers = #tpu.dot_dimension_numbers<[1], [0], [0], [1], [0, 0, 1, 1], [], []>} : vector<32x128xbf16>, vector<128x128xbf16>, vector<32x128xf32> -> vector<32x128xf32>
    %c0_3 = arith.constant 0 : index
    %c0_4 = arith.constant 0 : index
    %3 = vector.load %arg3[%c0_3, %c0_4] : memref<32x128xf32, #tpu.memory_space<vmem>>, vector<32x128xf32>
    tpu.vector_store %arg3[%c0_3, %c0_4], %2 {strides = array<i32>} : memref<32x128xf32, #tpu.memory_space<vmem>>, vector<32x128xf32>,
    %c0_i32 = arith.constant 0 : i32
    %4 = arith.cmpi eq, %arg0, %c0_i32 : i32
    %5 = arith.extui %4 : i1 to i32
    %c0_i32_5 = arith.constant 0 : i32
    %6 = arith.cmpi ne, %5, %c0_i32_5 : i32
    scf.if %6 {
      %cst_15 = arith.constant 0.000000e+00 : f32
      %29 = vector.broadcast %cst_15 : f32 to vector<8x128xf32>
      %c0_16 = arith.constant 0 : index
      %c0_17 = arith.constant 0 : index
      %30 = vector.load %arg4[%c0_16, %c0_17] : memref<8x128xf32, #tpu.memory_space<vmem>>, vector<8x128xf32>
      tpu.vector_store %arg4[%c0_16, %c0_17], %29 {strides = array<i32>} : memref<8x128xf32, #tpu.memory_space<vmem>>, vector<8x128xf32>,
    } else {
    }
    %cst_6 = arith.constant dense<0.000000e+00> : vector<128xf32>
    %7 = vector.multi_reduction <add>, %2, %cst_6 [0] : vector<32x128xf32> to vector<128xf32>
    %8 = vector.shape_cast %7 : vector<128xf32> to vector<1x128xf32>
    %9 = arith.mulf %2, %2 : vector<32x128xf32>
    %cst_7 = arith.constant dense<0.000000e+00> : vector<128xf32>
    %10 = vector.multi_reduction <add>, %9, %cst_7 [0] : vector<32x128xf32> to vector<128xf32>
    %11 = vector.shape_cast %10 : vector<128xf32> to vector<1x128xf32>
    %12 = tpu.iota {dimensions = array<i32: 0>} : vector<8x128xi32>
    %c0_i32_8 = arith.constant 0 : i32
    %13 = vector.broadcast %c0_i32_8 : i32 to vector<8x128xi32>
    %14 = arith.cmpi eq, %12, %13 : vector<8x128xi32>
    %cst_9 = arith.constant 0.000000e+00 : f32
    %15 = vector.shape_cast %8 : vector<1x128xf32> to vector<1x128xf32>
    %16 = vector.broadcast %15 : vector<1x128xf32> to vector<8x128xf32>
    %17 = vector.broadcast %cst_9 : f32 to vector<8x128xf32>
    %18 = arith.select %14, %16, %17 : vector<8x128xi1>, vector<8x128xf32>
    %c1_i32 = arith.constant 1 : i32
    %19 = vector.broadcast %c1_i32 : i32 to vector<8x128xi32>
    %20 = arith.cmpi eq, %12, %19 : vector<8x128xi32>
    %cst_10 = arith.constant 0.000000e+00 : f32
    %21 = vector.shape_cast %11 : vector<1x128xf32> to vector<1x128xf32>
    %22 = vector.broadcast %21 : vector<1x128xf32> to vector<8x128xf32>
    %23 = vector.broadcast %cst_10 : f32 to vector<8x128xf32>
    %24 = arith.select %20, %22, %23 : vector<8x128xi1>, vector<8x128xf32>
    %25 = arith.addf %18, %24 : vector<8x128xf32>
    %c0_11 = arith.constant 0 : index
    %c0_12 = arith.constant 0 : index
    %26 = vector.load %arg4[%c0_11, %c0_12] : memref<8x128xf32, #tpu.memory_space<vmem>>, vector<8x128xf32>
    %27 = arith.addf %26, %25 : vector<8x128xf32>
    %c0_13 = arith.constant 0 : index
    %c0_14 = arith.constant 0 : index
    %28 = vector.load %arg4[%c0_13, %c0_14] : memref<8x128xf32, #tpu.memory_space<vmem>>, vector<8x128xf32>
    tpu.vector_store %arg4[%c0_13, %c0_14], %27 {strides = array<i32>} : memref<8x128xf32, #tpu.memory_space<vmem>>, vector<8x128xf32>,
    return
  }
  func.func @transform_0(%arg0: i32) -> (i32, i32) {
    %c0_i32 = arith.constant 0 : i32
    %c0_i32_0 = arith.constant 0 : i32
    return %arg0, %c0_i32 : i32, i32
  }
  func.func @transform_1(%arg0: i32) -> (i32, i32) {
    %c0_i32 = arith.constant 0 : i32
    %c0_i32_0 = arith.constant 0 : i32
    %c0_i32_1 = arith.constant 0 : i32
    return %c0_i32, %c0_i32_0 : i32, i32
  }
  func.func @transform_2(%arg0: i32) -> (i32, i32) {
    %c0_i32 = arith.constant 0 : i32
    %c0_i32_0 = arith.constant 0 : i32
    return %arg0, %c0_i32 : i32, i32
  }
  func.func @transform_3(%arg0: i32) -> (i32, i32) {
    %c0_i32 = arith.constant 0 : i32
    %c0_i32_0 = arith.constant 0 : i32
    %c0_i32_1 = arith.constant 0 : i32
    return %c0_i32, %c0_i32_0 : i32, i32
  }
}

module attributes {stable_mosaic.version = 11 : i64} {
  func.func @_bn_act_kernel(%arg0: i32, %arg1: memref<128x128xf32, #tpu.memory_space<vmem>>, %arg2: memref<1x128xf32, #tpu.memory_space<vmem>>, %arg3: memref<1x128xf32, #tpu.memory_space<vmem>>, %arg4: memref<128x128xf32, #tpu.memory_space<vmem>>) attributes {dimension_semantics = [#tpu.dimension_semantics<parallel>], iteration_bounds = array<i64: 1>, scalar_prefetch = 0 : i64, scratch_operands = 0 : i64, tpu.core_type = #tpu.core_type<tc>, window_params = [{transform_indices = @transform_0, window_bounds = array<i64: 128, 128>}, {pipeline_mode = #tpu.pipeline_mode<synchronous>, transform_indices = @transform_1, window_bounds = array<i64: 1, 128>}, {pipeline_mode = #tpu.pipeline_mode<synchronous>, transform_indices = @transform_2, window_bounds = array<i64: 1, 128>}, {transform_indices = @transform_3, window_bounds = array<i64: 128, 128>}]} {
    %c0 = arith.constant 0 : index
    %c0_0 = arith.constant 0 : index
    %0 = vector.load %arg1[%c0, %c0_0] : memref<128x128xf32, #tpu.memory_space<vmem>>, vector<128x128xf32>
    %c0_1 = arith.constant 0 : index
    %c0_2 = arith.constant 0 : index
    %1 = vector.load %arg2[%c0_1, %c0_2] : memref<1x128xf32, #tpu.memory_space<vmem>>, vector<1x128xf32>
    %2 = vector.broadcast %1 : vector<1x128xf32> to vector<128x128xf32>
    %3 = arith.mulf %0, %2 : vector<128x128xf32>
    %c0_3 = arith.constant 0 : index
    %c0_4 = arith.constant 0 : index
    %4 = vector.load %arg3[%c0_3, %c0_4] : memref<1x128xf32, #tpu.memory_space<vmem>>, vector<1x128xf32>
    %5 = vector.broadcast %4 : vector<1x128xf32> to vector<128x128xf32>
    %6 = arith.addf %3, %5 : vector<128x128xf32>
    %cst = arith.constant 0.000000e+00 : f32
    %7 = vector.broadcast %cst : f32 to vector<128x128xf32>
    %8 = arith.maximumf %6, %7 : vector<128x128xf32>
    %c0_5 = arith.constant 0 : index
    %c0_6 = arith.constant 0 : index
    %9 = vector.load %arg4[%c0_5, %c0_6] : memref<128x128xf32, #tpu.memory_space<vmem>>, vector<128x128xf32>
    tpu.vector_store %arg4[%c0_5, %c0_6], %8 {strides = array<i32>} : memref<128x128xf32, #tpu.memory_space<vmem>>, vector<128x128xf32>,
    return
  }
  func.func @transform_0(%arg0: i32) -> (i32, i32) {
    %c0_i32 = arith.constant 0 : i32
    %c0_i32_0 = arith.constant 0 : i32
    return %arg0, %c0_i32 : i32, i32
  }
  func.func @transform_1(%arg0: i32) -> (i32, i32) {
    %c0_i32 = arith.constant 0 : i32
    %c0_i32_0 = arith.constant 0 : i32
    %c0_i32_1 = arith.constant 0 : i32
    return %c0_i32, %c0_i32_0 : i32, i32
  }
  func.func @transform_2(%arg0: i32) -> (i32, i32) {
    %c0_i32 = arith.constant 0 : i32
    %c0_i32_0 = arith.constant 0 : i32
    %c0_i32_1 = arith.constant 0 : i32
    return %c0_i32, %c0_i32_0 : i32, i32
  }
  func.func @transform_3(%arg0: i32) -> (i32, i32) {
    %c0_i32 = arith.constant 0 : i32
    %c0_i32_0 = arith.constant 0 : i32
    return %arg0, %c0_i32 : i32, i32
  }
}

module attributes {stable_mosaic.version = 11 : i64} {
  func.func @_matmul_act_kernel(%arg0: i32, %arg1: memref<128x128xbf16, #tpu.memory_space<vmem>>, %arg2: memref<128x128xbf16, #tpu.memory_space<vmem>>, %arg3: memref<128x128xf32, #tpu.memory_space<vmem>>) attributes {dimension_semantics = [#tpu.dimension_semantics<parallel>], iteration_bounds = array<i64: 1>, scalar_prefetch = 0 : i64, scratch_operands = 0 : i64, tpu.core_type = #tpu.core_type<tc>, window_params = [{transform_indices = @transform_0, window_bounds = array<i64: 128, 128>}, {pipeline_mode = #tpu.pipeline_mode<synchronous>, transform_indices = @transform_1, window_bounds = array<i64: 128, 128>}, {transform_indices = @transform_2, window_bounds = array<i64: 128, 128>}]} {
    %c0 = arith.constant 0 : index
    %c0_0 = arith.constant 0 : index
    %0 = vector.load %arg1[%c0, %c0_0] : memref<128x128xbf16, #tpu.memory_space<vmem>>, vector<128x128xbf16>
    %c0_1 = arith.constant 0 : index
    %c0_2 = arith.constant 0 : index
    %1 = vector.load %arg2[%c0_1, %c0_2] : memref<128x128xbf16, #tpu.memory_space<vmem>>, vector<128x128xbf16>
    %cst = arith.constant dense<0.000000e+00> : vector<128x128xf32>
    %2 = tpu.matmul %0, %1, %cst {dimension_numbers = #tpu.dot_dimension_numbers<[1], [0], [0], [1], [0, 0, 1, 1], [], []>} : vector<128x128xbf16>, vector<128x128xbf16>, vector<128x128xf32> -> vector<128x128xf32>
    %3 = math.tanh %2 : vector<128x128xf32>
    %c0_3 = arith.constant 0 : index
    %c0_4 = arith.constant 0 : index
    %4 = vector.load %arg3[%c0_3, %c0_4] : memref<128x128xf32, #tpu.memory_space<vmem>>, vector<128x128xf32>
    tpu.vector_store %arg3[%c0_3, %c0_4], %3 {strides = array<i32>} : memref<128x128xf32, #tpu.memory_space<vmem>>, vector<128x128xf32>,
    return
  }
  func.func @transform_0(%arg0: i32) -> (i32, i32) {
    %c0_i32 = arith.constant 0 : i32
    %c0_i32_0 = arith.constant 0 : i32
    return %arg0, %c0_i32 : i32, i32
  }
  func.func @transform_1(%arg0: i32) -> (i32, i32) {
    %c0_i32 = arith.constant 0 : i32
    %c0_i32_0 = arith.constant 0 : i32
    %c0_i32_1 = arith.constant 0 : i32
    return %c0_i32, %c0_i32_0 : i32, i32
  }
  func.func @transform_2(%arg0: i32) -> (i32, i32) {
    %c0_i32 = arith.constant 0 : i32
    %c0_i32_0 = arith.constant 0 : i32
    return %arg0, %c0_i32 : i32, i32
  }
}

</mosaic_0001>

<bundles_post_ra>
// kernel: _lambda_.15
= control target key start
LH: loop header
LB: loop body
LE: loop exit
PB: predicated region body
PF: predicated region fallthrough
CT: control target
= control target key end

     0   :  { %s512_s1 = inlined_call_operand.vmem [shape: bf16[128,128], index: 1, kind: input, shape index: {}]   ;;  %s513_s0 = inlined_call_operand.vmem [shape: bf16[128,128], index: 0, kind: input, shape index: {}]   ;;  %s514_s2 = inlined_call_operand.vmem [shape: f32[128,128], index: 2, kind: output, shape index: {}]  }
   0x1   :  { %v385_v0 = vld [vmem:[%s512_s1] sm:$0xff]   ;;  %v386_v1 = vld [vmem:[%s512_s1 + $0x8] sm:$0xff]   ;;  %v387_v2 = vld [vmem:[%s512_s1 + $0x10] sm:$0xff]  }
   0x2   :  { %337 = vmatprep.subr.bf16.mxu0 %v385_v0  ;;  %369 = vmatprep.subr.bf16.mxu1 %v385_v0  ;;  %v388_v3 = vld [vmem:[%s512_s1 + $0x18] sm:$0xff]   ;;  %v393_v4 = vld [vmem:[%s513_s0] sm:$0xff]   ;;  %v390_v7 = vld [vmem:[%s512_s1 + $0x28] sm:$0xff]  }
   0x3   :  { %338 = vmatpush3.bf16.msra.mxu0 %v385_v0  ;;  %377 = vmatpush3.bf16.msra.mxu1 %v385_v0  ;;  %v394_v5 = vld [vmem:[%s513_s0 + $0x20] sm:$0xff]   ;;  %v391_v8 = vld [vmem:[%s512_s1 + $0x30] sm:$0xff]   ;;  %v392_v9 = vld [vmem:[%s512_s1 + $0x38] sm:$0xff]  }
   0x4   :  { %339 = vmatprep.subr.bf16.mxu0 %v386_v1  ;;  %370 = vmatprep.subr.bf16.mxu1 %v386_v1  ;;  %v389_v6 = vld [vmem:[%s512_s1 + $0x20] sm:$0xff]   ;;  %v395_v10 = vld [vmem:[%s513_s0 + $0x8] sm:$0xff]   ;;  %v397_v12 = vld [vmem:[%s513_s0 + $0x10] sm:$0xff]  }
   0x5   :  { %353 = vmatprep.mubr.bf16.mxu0 %v393_v4  ;;  %361 = vmatprep.mubr.bf16.mxu1 %v394_v5  ;;  %v396_v11 = vld [vmem:[%s513_s0 + $0x28] sm:$0xff]   ;;  %v398_v13 = vld [vmem:[%s513_s0 + $0x30] sm:$0xff]   ;;  %v399_v14 = vld [vmem:[%s513_s0 + $0x18] sm:$0xff]  }
   0x6   :  { %v400_v15 = vld [vmem:[%s513_s0 + $0x38] sm:$0xff]  }
   0x7   :  { %340 = vmatpush3.bf16.msra.mxu0 %v386_v1  ;;  %378 = vmatpush3.bf16.msra.mxu1 %v386_v1 }
   0x8   :  { %341 = vmatprep.subr.bf16.mxu0 %v387_v2  ;;  %371 = vmatprep.subr.bf16.mxu1 %v387_v2 }
   0xb   :  { %342 = vmatpush3.bf16.msra.mxu0 %v387_v2  ;;  %379 = vmatpush3.bf16.msra.mxu1 %v387_v2 }
   0xc   :  { %343 = vmatprep.subr.bf16.mxu0 %v388_v3  ;;  %372 = vmatprep.subr.bf16.mxu1 %v388_v3 }
   0xf   :  { %344 = vmatpush3.bf16.msra.mxu0 %v388_v3  ;;  %380 = vmatpush3.bf16.msra.mxu1 %v388_v3 }
  0x10   :  { %345 = vmatprep.subr.bf16.mxu0 %v389_v6  ;;  %373 = vmatprep.subr.bf16.mxu1 %v389_v6 }
  0x13   :  { %346 = vmatpush3.bf16.msra.mxu0 %v389_v6  ;;  %381 = vmatpush3.bf16.msra.mxu1 %v389_v6 }
  0x14   :  { %347 = vmatprep.subr.bf16.mxu0 %v390_v7  ;;  %374 = vmatprep.subr.bf16.mxu1 %v390_v7 }
  0x17   :  { %348 = vmatpush3.bf16.msra.mxu0 %v390_v7  ;;  %382 = vmatpush3.bf16.msra.mxu1 %v390_v7 }
  0x18   :  { %349 = vmatprep.subr.bf16.mxu0 %v391_v8  ;;  %375 = vmatprep.subr.bf16.mxu1 %v391_v8 }
  0x1b   :  { %350 = vmatpush3.bf16.msra.mxu0 %v391_v8  ;;  %383 = vmatpush3.bf16.msra.mxu1 %v391_v8 }
  0x1c   :  { %351 = vmatprep.subr.bf16.mxu0 %v392_v9  ;;  %376 = vmatprep.subr.bf16.mxu1 %v392_v9 }
  0x1f   :  { %352 = vmatpush3.bf16.msra.mxu0 %v392_v9  ;;  %384 = vmatpush3.bf16.msra.mxu1 %v392_v9 }
  0x22   :  { %354 = vmatmul.mubr.bf16.vlgmr.msra.gmra.mrb[0].mxu0 %v395_v10  ;;  %362 = vmatmul.mubr.bf16.vlgmr.msra.gmra.mrb[0].mxu1 %v396_v11 }
  0x23   :  { %357 = vmatprep.mubr.bf16.mxu0 %v397_v12  ;;  %365 = vmatprep.mubr.bf16.mxu1 %v398_v13 }
  0x2a   :  { %358 = vmatmul.mubr.bf16.gmra.mrb[4].mxu0 %v399_v14  ;;  %366 = vmatmul.mubr.bf16.gmra.mrb[4].mxu1 %v400_v15 }
  0xf5   :  { %v355_v16 = vpop.f32.mrb[0].mxu0  ;;  %v363_v17 = vpop.f32.mrb[0].mxu1 }
  0xf6   :  { %vm239_vm0 = vcmp.gt.f32.partialorder %v355_v16, 0.0  ;;  %v255_v18 = vmul.f32 0.2, %v355_v16  ;;  %vm247_vm1 = vcmp.gt.f32.partialorder %v363_v17, 0.0  ;;  %v263_v19 = vmul.f32 0.2, %v363_v17 }
  0xf7   :  { %v174_v20 = vpop.f32.mrb[1].mxu0  ;;  %v206_v21 = vpop.f32.mrb[1].mxu1 }
  0xf8   :  { %v271_v22 = vsel %vm239_vm0, %v355_v16, %v255_v18  ;;  %v279_v23 = vsel %vm247_vm1, %v363_v17, %v263_v19  ;;  %vm237_vm2 = vcmp.gt.f32.partialorder %v174_v20, 0.0  ;;  %v253_v24 = vmul.f32 0.2, %v174_v20  ;;  %v356_v25 = vpop.f32.mrb[2].mxu0  ;;  %v364_v26 = vpop.f32.mrb[2].mxu1 }
  0xf9   :  { %287 = vst [vmem:[%s514_s2 + $0x10] sm:$0xff] %v271_v22  ;;  %295 = vst [vmem:[%s514_s2 + $0x50] sm:$0xff] %v279_v23  ;;  %vm245_vm3 = vcmp.gt.f32.partialorder %v206_v21, 0.0  ;;  %v261_v27 = vmul.f32 0.2, %v206_v21  ;;  %vm240_vm4 = vcmp.gt.f32.partialorder %v356_v25, 0.0 }
  0xfa   :  { %v256_v28 = vmul.f32 0.2, %v356_v25  ;;  %v269_v29 = vsel %vm237_vm2, %v174_v20, %v253_v24  ;;  %vm248_vm5 = vcmp.gt.f32.partialorder %v364_v26, 0.0  ;;  %v264_v30 = vmul.f32 0.2, %v364_v26  ;;  %v177_v31 = vpop.f32.mrb[3].mxu0 }
  0xfb   :  { %v209_v32 = vpop.f32.mrb[3].mxu1  ;;  %285 = vst [vmem:[%s514_s2] sm:$0xff] %v269_v29  ;;  %v277_v33 = vsel %vm245_vm3, %v206_v21, %v261_v27  ;;  %vm238_vm6 = vcmp.gt.f32.partialorder %v177_v31, 0.0  ;;  %v254_v35 = vmul.f32 0.2, %v177_v31 }
  0xfc   :  { %v272_v34 = vsel %vm240_vm4, %v356_v25, %v256_v28  ;;  %293 = vst [vmem:[%s514_s2 + $0x40] sm:$0xff] %v277_v33  ;;  %v280_v36 = vsel %vm248_vm5, %v364_v26, %v264_v30  ;;  %vm246_vm7 = vcmp.gt.f32.partialorder %v209_v32, 0.0  ;;  %v262_v37 = vmul.f32 0.2, %v209_v32 }
  0xfd   :  { %288 = vst [vmem:[%s514_s2 + $0x18] sm:$0xff] %v272_v34  ;;  %296 = vst [vmem:[%s514_s2 + $0x58] sm:$0xff] %v280_v36  ;;  %v270_v38 = vsel %vm238_vm6, %v177_v31, %v254_v35  ;;  %v359_v39 = vpop.f32.mrb[4].mxu0  ;;  %v367_v40 = vpop.f32.mrb[4].mxu1 }
  0xfe   :  { %286 = vst [vmem:[%s514_s2 + $0x8] sm:$0xff] %v270_v38  ;;  %v278_v41 = vsel %vm246_vm7, %v209_v32, %v262_v37  ;;  %vm243_vm8 = vcmp.gt.f32.partialorder %v359_v39, 0.0  ;;  %v259_v42 = vmul.f32 0.2, %v359_v39  ;;  %vm251_vm9 = vcmp.gt.f32.partialorder %v367_v40, 0.0  ;;  %v190_v43 = vpop.f32.mrb[5].mxu0 }
  0xff   :  { %v222_v44 = vpop.f32.mrb[5].mxu1  ;;  %294 = vst [vmem:[%s514_s2 + $0x48] sm:$0xff] %v278_v41  ;;  %v267_v45 = vmul.f32 0.2, %v367_v40  ;;  %vm241_vm10 = vcmp.gt.f32.partialorder %v190_v43, 0.0  ;;  %v360_v49 = vpop.f32.mrb[6].mxu0 }
 0x100   :  { %v257_v46 = vmul.f32 0.2, %v190_v43  ;;  %vm249_vm11 = vcmp.gt.f32.partialorder %v222_v44, 0.0  ;;  %v275_v47 = vsel %vm243_vm8, %v359_v39, %v259_v42  ;;  %v265_v48 = vmul.f32 0.2, %v222_v44  ;;  %v368_v50 = vpop.f32.mrb[6].mxu1 }
 0x101   :  { %291 = vst [vmem:[%s514_s2 + $0x30] sm:$0xff] %v275_v47  ;;  %v283_v51 = vsel %vm251_vm9, %v367_v40, %v267_v45  ;;  %vm244_vm12 = vcmp.gt.f32.partialorder %v360_v49, 0.0  ;;  %v260_v53 = vmul.f32 0.2, %v360_v49  ;;  %v193_v54 = vpop.f32.mrb[7].mxu0  ;;  %v225_v55 = vpop.f32.mrb[7].mxu1 }
 0x102   :  { %v273_v52 = vsel %vm241_vm10, %v190_v43, %v257_v46  ;;  %299 = vst [vmem:[%s514_s2 + $0x70] sm:$0xff] %v283_v51  ;;  %v281_v56 = vsel %vm249_vm11, %v222_v44, %v265_v48  ;;  %vm252_vm13 = vcmp.gt.f32.partialorder %v368_v50, 0.0  ;;  %v268_v57 = vmul.f32 0.2, %v368_v50 }
 0x103   :  { %289 = vst [vmem:[%s514_s2 + $0x20] sm:$0xff] %v273_v52  ;;  %vm242_vm14 = vcmp.gt.f32.partialorder %v193_v54, 0.0  ;;  %297 = vst [vmem:[%s514_s2 + $0x60] sm:$0xff] %v281_v56  ;;  %v276_v58 = vsel %vm244_vm12, %v360_v49, %v260_v53  ;;  %v258_v59 = vmul.f32 0.2, %v193_v54  ;;  %vm250_vm15 = vcmp.gt.f32.partialorder %v225_v55, 0.0 }
 0x104   :  { %v266_v60 = vmul.f32 0.2, %v225_v55  ;;  %292 = vst [vmem:[%s514_s2 + $0x38] sm:$0xff] %v276_v58  ;;  %v284_v61 = vsel %vm252_vm13, %v368_v50, %v268_v57 }
 0x105   :  { %300 = vst [vmem:[%s514_s2 + $0x78] sm:$0xff] %v284_v61  ;;  %v274_v62 = vsel %vm242_vm14, %v193_v54, %v258_v59 }
 0x106   :  { %v282_v63 = vsel %vm250_vm15, %v225_v55, %v266_v60  ;;  %290 = vst [vmem:[%s514_s2 + $0x28] sm:$0xff] %v274_v62 }
 0x107   :  { %298 = vst [vmem:[%s514_s2 + $0x68] sm:$0xff] %v282_v63 }

// kernel: _lambda_.17
= control target key start
LH: loop header
LB: loop body
LE: loop exit
PB: predicated region body
PF: predicated region fallthrough
CT: control target
= control target key end

     0   :  { %s112_s0 = inlined_call_operand.vmem [shape: f32[32,128], index: 0, kind: input, shape index: {}]   ;;  %s113_s1 = inlined_call_operand.vmem [shape: f32[1,128], index: 1, kind: input, shape index: {}]   ;;  %s114_s2 = inlined_call_operand.vmem [shape: f32[1,128], index: 2, kind: input, shape index: {}]   ;;  %s115_s3 = inlined_call_operand.vmem [shape: f32[32,128], index: 3, kind: output, shape index: {}]  }
   0x1   :  { %v14_v0 = vld [vmem:[%s112_s0] sm:$0xff]  ;;  %v15_v4 = vld [vmem:[%s112_s0 + $0x8] sm:$0xff]  ;;  %v16_v5 = vld [vmem:[%s112_s0 + $0x10] sm:$0xff] }
   0x2   :  { %v60_v1 = vld [vmem:[%s113_s1] ss:$0 sm:$0xff]  ;;  %v17_v6 = vld [vmem:[%s112_s0 + $0x18] sm:$0xff] }
   0x3   :  { %v61_v2 = vld [vmem:[%s114_s2] ss:$0 sm:$0xff]  ;;  %v25_v3 = vmul.f32 %v60_v1, %v14_v0  ;;  %v26_v7 = vmul.f32 %v60_v1, %v15_v4  ;;  %v27_v8 = vmul.f32 %v60_v1, %v16_v5  ;;  %v28_v9 = vmul.f32 %v60_v1, %v17_v6 }
   0x5   :  { %v36_v10 = vadd.f32 %v61_v2, %v25_v3  ;;  %v37_v11 = vadd.f32 %v61_v2, %v26_v7  ;;  %v38_v12 = vadd.f32 %v61_v2, %v27_v8  ;;  %v39_v13 = vadd.f32 %v61_v2, %v28_v9 }
   0x7   :  { %vm40_vm0 = vcmp.gt.f32.partialorder %v36_v10, 0.0  ;;  %v44_v14 = vmul.f32 0.2, %v36_v10  ;;  %vm41_vm1 = vcmp.gt.f32.partialorder %v37_v11, 0.0  ;;  %v45_v15 = vmul.f32 0.2, %v37_v11 }
   0x8   :  { %vm42_vm2 = vcmp.gt.f32.partialorder %v38_v12, 0.0  ;;  %v46_v16 = vmul.f32 0.2, %v38_v12  ;;  %vm43_vm3 = vcmp.gt.f32.partialorder %v39_v13, 0.0  ;;  %v47_v18 = vmul.f32 0.2, %v39_v13 }
   0x9   :  { %v48_v17 = vsel %vm40_vm0, %v36_v10, %v44_v14  ;;  %v49_v19 = vsel %vm41_vm1, %v37_v11, %v45_v15 }
   0xa   :  { %52 = vst [vmem:[%s115_s3] sm:$0xff] %v48_v17  ;;  %v50_v20 = vsel %vm42_vm2, %v38_v12, %v46_v16  ;;  %53 = vst [vmem:[%s115_s3 + $0x8] sm:$0xff] %v49_v19  ;;  %v51_v21 = vsel %vm43_vm3, %v39_v13, %v47_v18 }
   0xb   :  { %54 = vst [vmem:[%s115_s3 + $0x10] sm:$0xff] %v50_v20  ;;  %55 = vst [vmem:[%s115_s3 + $0x18] sm:$0xff] %v51_v21 }

// kernel: _lambda_.16
= control target key start
LH: loop header
LB: loop body
LE: loop exit
PB: predicated region body
PF: predicated region fallthrough
CT: control target
= control target key end

     0   :  { %v246_v45 = vlaneseq  ;;  %s446_s1 = inlined_call_operand.vmem [shape: bf16[256,128], index: 1, kind: input, shape index: {}]   ;;  %s447_s0 = inlined_call_operand.vmem [shape: bf16[32,256], index: 0, kind: input, shape index: {}]   ;;  %s448_s2 = inlined_call_operand.vmem [shape: f32[32,128], index: 2, kind: output, shape index: {0}]   ;;  %s449_s3 = inlined_call_operand.vmem [shape: f32[8,128], index: 3, kind: output, shape index: {1}]  }
   0x1   :  { %v329_v0 = vld [vmem:[%s446_s1 + $0x40] sm:$0xff]   ;;  %v331_v2 = vld [vmem:[%s446_s1 + $0x48] sm:$0xff]   ;;  %v333_v4 = vld [vmem:[%s446_s1 + $0x50] sm:$0xff]  }
   0x2   :  { %v330_v1 = vld [vmem:[%s446_s1] sm:$0xff]   ;;  %284 = vmatprep.subr.bf16.mxu0 %v329_v0  ;;  %312 = vmatprep.subr.bf16.mxu1 %v329_v0  ;;  %v332_v3 = vld [vmem:[%s446_s1 + $0x8] sm:$0xff]   ;;  %v334_v5 = vld [vmem:[%s446_s1 + $0x10] sm:$0xff]   ;;  %v247_v50 = vshrl.u32 %v246_v45, 7 }
   0x3   :  { %285 = vmatpush3.bf16.msra.mxu0 %v330_v1  ;;  %320 = vmatpush3.bf16.msra.mxu1 %v330_v1  ;;  %v335_v6 = vld [vmem:[%s446_s1 + $0x58] sm:$0xff]   ;;  %v337_v8 = vld [vmem:[%s446_s1 + $0x60] sm:$0xff]   ;;  %v339_v10 = vld [vmem:[%s446_s1 + $0x68] sm:$0xff]  }
   0x4   :  { %286 = vmatprep.subr.bf16.mxu0 %v331_v2  ;;  %313 = vmatprep.subr.bf16.mxu1 %v331_v2  ;;  %v336_v7 = vld [vmem:[%s446_s1 + $0x18] sm:$0xff]   ;;  %v338_v9 = vld [vmem:[%s446_s1 + $0x20] sm:$0xff]   ;;  %v340_v13 = vld [vmem:[%s446_s1 + $0x28] sm:$0xff]   ;;  %vm248_vm0 = vcmp.eq.s32.totalorder %v247_v50, 0  ;;  %vm250_vm1 = vcmp.eq.s32.totalorder %v247_v50, 1 }
   0x5   :  { %v347_v11 = vld [vmem:[%s447_s0 + $0x4] ss:$8 sps:$4 sm:$0xff]   ;;  %v350_v12 = vld [vmem:[%s447_s0 + $0x14] ss:$8 sps:$4 sm:$0xff]   ;;  %v345_v18 = vld [vmem:[%s447_s0] ss:$8 sps:$4 sm:$0xff]  }
   0x6   :  { %v341_v14 = vld [vmem:[%s446_s1 + $0x70] sm:$0xff]   ;;  %198 = vmatprep.mubr.bf16.mxu0 %v347_v11  ;;  %206 = vmatprep.mubr.bf16.mxu1 %v350_v12  ;;  %v343_v16 = vld [vmem:[%s446_s1 + $0x78] sm:$0xff]  }
   0x7   :  { %287 = vmatpush3.bf16.msra.mxu0 %v332_v3  ;;  %321 = vmatpush3.bf16.msra.mxu1 %v332_v3  ;;  %v342_v15 = vld [vmem:[%s446_s1 + $0x30] sm:$0xff]   ;;  %v344_v17 = vld [vmem:[%s446_s1 + $0x38] sm:$0xff]  }
   0x8   :  { %288 = vmatprep.subr.bf16.mxu0 %v333_v4  ;;  %314 = vmatprep.subr.bf16.mxu1 %v333_v4  ;;  %v348_v19 = vld [vmem:[%s447_s0 + $0x10] ss:$8 sps:$4 sm:$0xff]  }
   0xb   :  { %289 = vmatpush3.bf16.msra.mxu0 %v334_v5  ;;  %322 = vmatpush3.bf16.msra.mxu1 %v334_v5 }
   0xc   :  { %290 = vmatprep.subr.bf16.mxu0 %v335_v6  ;;  %315 = vmatprep.subr.bf16.mxu1 %v335_v6 }
   0xf   :  { %291 = vmatpush3.bf16.msra.mxu0 %v336_v7  ;;  %323 = vmatpush3.bf16.msra.mxu1 %v336_v7 }
  0x10   :  { %292 = vmatprep.subr.bf16.mxu0 %v337_v8  ;;  %316 = vmatprep.subr.bf16.mxu1 %v337_v8 }
  0x13   :  { %293 = vmatpush3.bf16.msra.mxu0 %v338_v9  ;;  %324 = vmatpush3.bf16.msra.mxu1 %v338_v9 }
  0x14   :  { %294 = vmatprep.subr.bf16.mxu0 %v339_v10  ;;  %317 = vmatprep.subr.bf16.mxu1 %v339_v10 }
  0x17   :  { %295 = vmatpush3.bf16.msra.mxu0 %v340_v13  ;;  %325 = vmatpush3.bf16.msra.mxu1 %v340_v13 }
  0x18   :  { %296 = vmatprep.subr.bf16.mxu0 %v341_v14  ;;  %318 = vmatprep.subr.bf16.mxu1 %v341_v14 }
  0x1b   :  { %297 = vmatpush3.bf16.msra.mxu0 %v342_v15  ;;  %326 = vmatpush3.bf16.msra.mxu1 %v342_v15 }
  0x1c   :  { %298 = vmatprep.subr.bf16.mxu0 %v343_v16  ;;  %319 = vmatprep.subr.bf16.mxu1 %v343_v16 }
  0x1f   :  { %299 = vmatpush3.bf16.msra.mxu0 %v344_v17  ;;  %327 = vmatpush3.bf16.msra.mxu1 %v344_v17 }
  0x22   :  { %199 = vmatmul.mubr.bf16.vlgmr.msra.gmra.mrb[0].mxu0 %v345_v18  ;;  %207 = vmatmul.mubr.bf16.vlgmr.msra.gmra.mrb[0].mxu1 %v348_v19 }
  0xf5   :  { %v300_v20 = vpop.f32.mrb[0].mxu0  ;;  %v306_v21 = vpop.f32.mrb[0].mxu1 }
  0xf6   :  { %v301_v22 = vpop.f32.mrb[1].mxu0  ;;  %v307_v23 = vpop.f32.mrb[1].mxu1 }
  0xf7   :  { %v302_v24 = vadd.f32 %v301_v22, %v300_v20  ;;  %v303_v25 = vpop.f32.mrb[2].mxu0  ;;  %v308_v26 = vadd.f32 %v307_v23, %v306_v21  ;;  %v309_v27 = vpop.f32.mrb[2].mxu1 }
  0xf8   :  { %v304_v28 = vpop.f32.mrb[3].mxu0  ;;  %v310_v29 = vpop.f32.mrb[3].mxu1 }
  0xf9   :  { %215 = vst [vmem:[%s448_s2] sm:$0xff] %v302_v24  ;;  %217 = vst [vmem:[%s448_s2 + $0x10] sm:$0xff] %v308_v26  ;;  %v305_v30 = vadd.f32 %v304_v28, %v303_v25  ;;  %v311_v31 = vadd.f32 %v310_v29, %v309_v27  ;;  %v233_v32 = vmul.f32 %v302_v24, %v302_v24 }
  0xfa   :  { %v235_v33 = vmul.f32 %v308_v26, %v308_v26 }
  0xfb   :  { %216 = vst [vmem:[%s448_s2 + $0x8] sm:$0xff] %v305_v30  ;;  %v224_v34 = vadd.f32 %v305_v30, %v302_v24  ;;  %v234_v35 = vmul.f32 %v305_v30, %v305_v30  ;;  %218 = vst [vmem:[%s448_s2 + $0x18] sm:$0xff] %v311_v31  ;;  %v236_v39 = vmul.f32 %v311_v31, %v311_v31 }
  0xfd   :  { %v237_v36 = vadd.f32 %v234_v35, %v233_v32  ;;  %v225_v37 = vadd.f32 %v308_v26, %v224_v34 }
  0xff   :  { %v226_v38 = vadd.f32 %v311_v31, %v225_v37  ;;  %v238_v40 = vadd.f32 %v237_v36, %v235_v33 }
 0x101   :  { %v227_v41 = vrot.slane %v226_v38, 4  ;;  %v239_v42 = vadd.f32 %v238_v40, %v236_v39 }
 0x103   :  { %v228_v43 = vadd.f32 %v227_v41, %v226_v38  ;;  %v240_v44 = vrot.slane %v239_v42, 4 }
 0x105   :  { %v229_v46 = vrot.slane %v228_v43, 2  ;;  %v241_v47 = vadd.f32 %v240_v44, %v239_v42 }
 0x107   :  { %v230_v48 = vadd.f32 %v229_v46, %v228_v43  ;;  %v242_v49 = vrot.slane %v241_v47, 2 }
 0x109   :  { %v231_v51 = vrot.slane %v230_v48, 1  ;;  %v243_v52 = vadd.f32 %v242_v49, %v241_v47 }
 0x10b   :  { %v232_v53 = vadd.f32 %v231_v51, %v230_v48  ;;  %v244_v54 = vrot.slane %v243_v52, 1 }
 0x10d   :  { %v245_v55 = vadd.f32 %v244_v54, %v243_v52  ;;  %v249_v56 = vsel %vm248_vm0, %v232_v53, 0.0 }
 0x10f   :  { %v251_v57 = vsel %vm250_vm1, %v245_v55, 0.0 }
 0x110   :  { %v252_v58 = vadd.f32 %v251_v57, %v249_v56 }
 0x112   :  { %255 = vst [vmem:[%s449_s3] sm:$0xff] %v252_v58 }

// kernel: _lambda_.18
= control target key start
LH: loop header
LB: loop body
LE: loop exit
PB: predicated region body
PF: predicated region fallthrough
CT: control target
= control target key end

     0   :  { %s605_s1 = inlined_call_operand.vmem [shape: bf16[512,128], index: 1, kind: input, shape index: {}]   ;;  %s606_s0 = inlined_call_operand.vmem [shape: bf16[8,512], index: 0, kind: input, shape index: {}]   ;;  %s607_s2 = inlined_call_operand.vmem [shape: f32[8,128], index: 2, kind: output, shape index: {}]  }
   0x1   :  { %v449_v0 = vld [vmem:[%s605_s1 + $0x40] sm:$0xff]   ;;  %v453_v4 = vld [vmem:[%s605_s1 + $0x48] sm:$0xff]   ;;  %v457_v8 = vld [vmem:[%s605_s1 + $0x50] sm:$0xff]  }
   0x2   :  { %v450_v1 = vld [vmem:[%s605_s1 + $0xc0] sm:$0xff]   ;;  %405 = vmatprep.subr.bf16.mxu0 %v449_v0  ;;  %v454_v5 = vld [vmem:[%s605_s1 + $0xc8] sm:$0xff]   ;;  %v458_v9 = vld [vmem:[%s605_s1 + $0xd0] sm:$0xff]  }
   0x3   :  { %v451_v2 = vld [vmem:[%s605_s1] sm:$0xff]   ;;  %427 = vmatprep.subr.bf16.mxu1 %v450_v1  ;;  %v455_v6 = vld [vmem:[%s605_s1 + $0x8] sm:$0xff]   ;;  %v459_v10 = vld [vmem:[%s605_s1 + $0x10] sm:$0xff]  }
   0x4   :  { %v452_v3 = vld [vmem:[%s605_s1 + $0x80] sm:$0xff]   ;;  %406 = vmatpush3.bf16.msra.mxu0 %v451_v2  ;;  %v456_v7 = vld [vmem:[%s605_s1 + $0x88] sm:$0xff]   ;;  %v460_v11 = vld [vmem:[%s605_s1 + $0x90] sm:$0xff]  }
   0x5   :  { %428 = vmatpush3.bf16.msra.mxu1 %v452_v3  ;;  %407 = vmatprep.subr.bf16.mxu0 %v453_v4  ;;  %v461_v12 = vld [vmem:[%s605_s1 + $0x58] sm:$0xff]   ;;  %v465_v16 = vld [vmem:[%s605_s1 + $0x60] sm:$0xff]   ;;  %v469_v20 = vld [vmem:[%s605_s1 + $0x68] sm:$0xff]  }
   0x6   :  { %429 = vmatprep.subr.bf16.mxu1 %v454_v5  ;;  %v462_v13 = vld [vmem:[%s605_s1 + $0xd8] sm:$0xff]   ;;  %v466_v17 = vld [vmem:[%s605_s1 + $0xe0] sm:$0xff]   ;;  %v470_v21 = vld [vmem:[%s605_s1 + $0xe8] sm:$0xff]  }
   0x7   :  { %v463_v14 = vld [vmem:[%s605_s1 + $0x18] sm:$0xff]   ;;  %v467_v18 = vld [vmem:[%s605_s1 + $0x20] sm:$0xff]   ;;  %v471_v22 = vld [vmem:[%s605_s1 + $0x28] sm:$0xff]  }
   0x8   :  { %408 = vmatpush3.bf16.msra.mxu0 %v455_v6  ;;  %v464_v15 = vld [vmem:[%s605_s1 + $0x98] sm:$0xff]   ;;  %v468_v19 = vld [vmem:[%s605_s1 + $0xa0] sm:$0xff]   ;;  %v472_v23 = vld [vmem:[%s605_s1 + $0xa8] sm:$0xff]  }
   0x9   :  { %430 = vmatpush3.bf16.msra.mxu1 %v456_v7  ;;  %409 = vmatprep.subr.bf16.mxu0 %v457_v8  ;;  %v473_v24 = vld [vmem:[%s605_s1 + $0x70] sm:$0xff]   ;;  %v477_v28 = vld [vmem:[%s605_s1 + $0x78] sm:$0xff]   ;;  %v12_v32 = vld [vmem:[%s606_s0] sm:$0xff] }
   0xa   :  { %431 = vmatprep.subr.bf16.mxu1 %v458_v9  ;;  %v474_v25 = vld [vmem:[%s605_s1 + $0xf0] sm:$0xff]   ;;  %v478_v29 = vld [vmem:[%s605_s1 + $0xf8] sm:$0xff]   ;;  %v13_v33 = vld [vmem:[%s606_s0 + $0x8] sm:$0xff]  ;;  %v369_v34 = vcombine.low %v12_v32, %v12_v32  ;;  %v370_v35 = vcombine.high %v12_v32, %v12_v32 }
   0xb   :  { %v475_v26 = vld [vmem:[%s605_s1 + $0x30] sm:$0xff]   ;;  %v479_v30 = vld [vmem:[%s605_s1 + $0x38] sm:$0xff]   ;;  %v371_v36 = vcombine.low %v13_v33, %v13_v33  ;;  %v372_v37 = vcombine.high %v13_v33, %v13_v33 }
   0xc   :  { %410 = vmatpush3.bf16.msra.mxu0 %v459_v10  ;;  %v476_v27 = vld [vmem:[%s605_s1 + $0xb0] sm:$0xff]   ;;  %v480_v31 = vld [vmem:[%s605_s1 + $0xb8] sm:$0xff]   ;;  %316 = vmatprep.mubr.bf16.mxu0 %v370_v35 }
   0xd   :  { %432 = vmatpush3.bf16.msra.mxu1 %v460_v11  ;;  %411 = vmatprep.subr.bf16.mxu0 %v461_v12 }
   0xe   :  { %433 = vmatprep.subr.bf16.mxu1 %v462_v13  ;;  %356 = vmatprep.mubr.bf16.mxu1 %v372_v37 }
  0x10   :  { %412 = vmatpush3.bf16.msra.mxu0 %v463_v14 }
  0x11   :  { %434 = vmatpush3.bf16.msra.mxu1 %v464_v15  ;;  %413 = vmatprep.subr.bf16.mxu0 %v465_v16 }
  0x12   :  { %435 = vmatprep.subr.bf16.mxu1 %v466_v17 }
  0x14   :  { %414 = vmatpush3.bf16.msra.mxu0 %v467_v18 }
  0x15   :  { %436 = vmatpush3.bf16.msra.mxu1 %v468_v19  ;;  %415 = vmatprep.subr.bf16.mxu0 %v469_v20 }
  0x16   :  { %437 = vmatprep.subr.bf16.mxu1 %v470_v21 }
  0x18   :  { %416 = vmatpush3.bf16.msra.mxu0 %v471_v22 }
  0x19   :  { %438 = vmatpush3.bf16.msra.mxu1 %v472_v23  ;;  %417 = vmatprep.subr.bf16.mxu0 %v473_v24 }
  0x1a   :  { %439 = vmatprep.subr.bf16.mxu1 %v474_v25 }
  0x1c   :  { %418 = vmatpush3.bf16.msra.mxu0 %v475_v26 }
  0x1d   :  { %440 = vmatpush3.bf16.msra.mxu1 %v476_v27  ;;  %419 = vmatprep.subr.bf16.mxu0 %v477_v28 }
  0x1e   :  { %441 = vmatprep.subr.bf16.mxu1 %v478_v29 }
  0x20   :  { %420 = vmatpush3.bf16.msra.mxu0 %v479_v30 }
  0x21   :  { %442 = vmatpush3.bf16.msra.mxu1 %v480_v31 }
  0x23   :  { %317 = vmatmul.mubr.bf16.vlgmr.msra.gmra.mrb[0].mxu0 %v369_v34 }
  0x24   :  { %357 = vmatmul.mubr.bf16.vlgmr.msra.gmra.mrb[0].mxu1 %v371_v36 }
  0xf6   :  { %v421_v38 = vpop.f32.mrb[0].mxu0 }
  0xf7   :  { %v443_v39 = vpop.f32.mrb[0].mxu1  ;;  %v422_v40 = vpop.f32.mrb[1].mxu0 }
  0xf8   :  { %v444_v41 = vpop.f32.mrb[1].mxu1  ;;  %v423_v42 = vadd.f32 %v422_v40, %v421_v38  ;;  %v424_v44 = vpop.f32.mrb[2].mxu0 }
  0xf9   :  { %v445_v43 = vadd.f32 %v444_v41, %v443_v39  ;;  %v446_v45 = vpop.f32.mrb[2].mxu1  ;;  %v425_v46 = vpop.f32.mrb[3].mxu0 }
  0xfa   :  { %v447_v47 = vpop.f32.mrb[3].mxu1 }
  0xfb   :  { %v359_v48 = vadd.f32 %v445_v43, %v423_v42 }
  0xfd   :  { %364 = vst [vmem:[%s607_s2] sm:$0xff] %v359_v48 }

// kernel: _lambda_.19
= control target key start
LH: loop header
LB: loop body
LE: loop exit
PB: predicated region body
PF: predicated region fallthrough
CT: control target
= control target key end

     0   :  { %s761_s1 = inlined_call_operand.vmem [shape: bf16[512,128], index: 1, kind: input, shape index: {}]   ;;  %s762_s0 = inlined_call_operand.vmem [shape: bf16[32,512], index: 0, kind: input, shape index: {}]   ;;  %s763_s2 = inlined_call_operand.vmem [shape: f32[32,128], index: 2, kind: output, shape index: {0}]   ;;  %s764_s3 = inlined_call_operand.vmem [shape: f32[8,128], index: 3, kind: output, shape index: {1}]  }
   0x1   :  { %v562_v0 = vld [vmem:[%s761_s1 + $0x40] sm:$0xff]   ;;  %v566_v4 = vld [vmem:[%s761_s1 + $0x48] sm:$0xff]   ;;  %v570_v8 = vld [vmem:[%s761_s1 + $0x50] sm:$0xff]  }
   0x2   :  { %v563_v1 = vld [vmem:[%s761_s1 + $0xc0] sm:$0xff]   ;;  %505 = vmatprep.subr.bf16.mxu0 %v562_v0  ;;  %v567_v5 = vld [vmem:[%s761_s1 + $0xc8] sm:$0xff]   ;;  %v571_v9 = vld [vmem:[%s761_s1 + $0xd0] sm:$0xff]  }
   0x3   :  { %v564_v2 = vld [vmem:[%s761_s1] sm:$0xff]   ;;  %533 = vmatprep.subr.bf16.mxu1 %v563_v1  ;;  %v568_v6 = vld [vmem:[%s761_s1 + $0x8] sm:$0xff]   ;;  %v572_v10 = vld [vmem:[%s761_s1 + $0x10] sm:$0xff]  }
   0x4   :  { %v565_v3 = vld [vmem:[%s761_s1 + $0x80] sm:$0xff]   ;;  %506 = vmatpush3.bf16.msra.mxu0 %v564_v2  ;;  %v569_v7 = vld [vmem:[%s761_s1 + $0x88] sm:$0xff]   ;;  %v573_v11 = vld [vmem:[%s761_s1 + $0x90] sm:$0xff]  }
   0x5   :  { %534 = vmatpush3.bf16.msra.mxu1 %v565_v3  ;;  %507 = vmatprep.subr.bf16.mxu0 %v566_v4  ;;  %v574_v12 = vld [vmem:[%s761_s1 + $0x58] sm:$0xff]   ;;  %v578_v16 = vld [vmem:[%s761_s1 + $0x60] sm:$0xff]   ;;  %v582_v20 = vld [vmem:[%s761_s1 + $0x68] sm:$0xff]  }
   0x6   :  { %535 = vmatprep.subr.bf16.mxu1 %v567_v5  ;;  %v575_v13 = vld [vmem:[%s761_s1 + $0xd8] sm:$0xff]   ;;  %v579_v17 = vld [vmem:[%s761_s1 + $0xe0] sm:$0xff]   ;;  %v583_v21 = vld [vmem:[%s761_s1 + $0xe8] sm:$0xff]  }
   0x7   :  { %v576_v14 = vld [vmem:[%s761_s1 + $0x18] sm:$0xff]   ;;  %v580_v18 = vld [vmem:[%s761_s1 + $0x20] sm:$0xff]   ;;  %v584_v22 = vld [vmem:[%s761_s1 + $0x28] sm:$0xff]  }
   0x8   :  { %508 = vmatpush3.bf16.msra.mxu0 %v568_v6  ;;  %v577_v15 = vld [vmem:[%s761_s1 + $0x98] sm:$0xff]   ;;  %v581_v19 = vld [vmem:[%s761_s1 + $0xa0] sm:$0xff]   ;;  %v585_v23 = vld [vmem:[%s761_s1 + $0xa8] sm:$0xff]  }
   0x9   :  { %536 = vmatpush3.bf16.msra.mxu1 %v569_v7  ;;  %509 = vmatprep.subr.bf16.mxu0 %v570_v8  ;;  %v586_v24 = vld [vmem:[%s761_s1 + $0x70] sm:$0xff]   ;;  %v590_v28 = vld [vmem:[%s761_s1 + $0x78] sm:$0xff]  }
   0xa   :  { %537 = vmatprep.subr.bf16.mxu1 %v571_v9  ;;  %v587_v25 = vld [vmem:[%s761_s1 + $0xf0] sm:$0xff]   ;;  %v591_v29 = vld [vmem:[%s761_s1 + $0xf8] sm:$0xff]  }
   0xb   :  { %v588_v26 = vld [vmem:[%s761_s1 + $0x30] sm:$0xff]   ;;  %v592_v30 = vld [vmem:[%s761_s1 + $0x38] sm:$0xff]  }
   0xc   :  { %510 = vmatpush3.bf16.msra.mxu0 %v572_v10  ;;  %v589_v27 = vld [vmem:[%s761_s1 + $0xb0] sm:$0xff]   ;;  %v593_v31 = vld [vmem:[%s761_s1 + $0xb8] sm:$0xff]  }
   0xd   :  { %538 = vmatpush3.bf16.msra.mxu1 %v573_v11  ;;  %511 = vmatprep.subr.bf16.mxu0 %v574_v12  ;;  %v594_v32 = vld [vmem:[%s762_s0] ss:$16 sps:$4 sm:$0xff]   ;;  %v596_v33 = vld [vmem:[%s762_s0 + $0x4] ss:$16 sps:$4 sm:$0xff]   ;;  %v597_v34 = vld [vmem:[%s762_s0 + $0x8] ss:$16 sps:$4 sm:$0xff]  }
   0xe   :  { %539 = vmatprep.subr.bf16.mxu1 %v575_v13  ;;  %v599_v35 = vld [vmem:[%s762_s0 + $0xc] ss:$16 sps:$4 sm:$0xff]   ;;  %350 = vmatprep.mubr.bf16.mxu0 %v596_v33  ;;  %v600_v36 = vld [vmem:[%s762_s0 + $0x24] ss:$16 sps:$4 sm:$0xff]   ;;  %v604_v38 = vld [vmem:[%s762_s0 + $0x20] ss:$16 sps:$4 sm:$0xff]  }
   0xf   :  { %399 = vmatprep.mubr.bf16.mxu1 %v599_v35  ;;  %v602_v37 = vld [vmem:[%s762_s0 + $0x2c] ss:$16 sps:$4 sm:$0xff]   ;;  %v605_v39 = vld [vmem:[%s762_s0 + $0x28] ss:$16 sps:$4 sm:$0xff]  }
  0x10   :  { %512 = vmatpush3.bf16.msra.mxu0 %v576_v14 }
  0x11   :  { %540 = vmatpush3.bf16.msra.mxu1 %v577_v15  ;;  %513 = vmatprep.subr.bf16.mxu0 %v578_v16 }
  0x12   :  { %541 = vmatprep.subr.bf16.mxu1 %v579_v17  ;;  %v447_v17 = vlaneseq }
  0x14   :  { %514 = vmatpush3.bf16.msra.mxu0 %v580_v18 }
  0x15   :  { %542 = vmatpush3.bf16.msra.mxu1 %v581_v19  ;;  %515 = vmatprep.subr.bf16.mxu0 %v582_v20 }
  0x16   :  { %543 = vmatprep.subr.bf16.mxu1 %v583_v21 }
  0x18   :  { %516 = vmatpush3.bf16.msra.mxu0 %v584_v22  ;;  %v448_v22 = vshrl.u32 %v447_v17, 7 }
  0x19   :  { %544 = vmatpush3.bf16.msra.mxu1 %v585_v23  ;;  %517 = vmatprep.subr.bf16.mxu0 %v586_v24 }
  0x1a   :  { %545 = vmatprep.subr.bf16.mxu1 %v587_v25  ;;  %vm449_vm0 = vcmp.eq.s32.totalorder %v448_v22, 0  ;;  %vm451_vm1 = vcmp.eq.s32.totalorder %v448_v22, 1 }
  0x1c   :  { %518 = vmatpush3.bf16.msra.mxu0 %v588_v26 }
  0x1d   :  { %546 = vmatpush3.bf16.msra.mxu1 %v589_v27  ;;  %519 = vmatprep.subr.bf16.mxu0 %v590_v28 }
  0x1e   :  { %547 = vmatprep.subr.bf16.mxu1 %v591_v29 }
  0x20   :  { %520 = vmatpush3.bf16.msra.mxu0 %v592_v30 }
  0x21   :  { %548 = vmatpush3.bf16.msra.mxu1 %v593_v31 }
  0x23   :  { %351 = vmatmul.mubr.bf16.vlgmr.msra.gmra.mrb[0].mxu0 %v594_v32 }
  0x24   :  { %400 = vmatmul.mubr.bf16.vlgmr.msra.gmra.mrb[0].mxu1 %v597_v34  ;;  %358 = vmatprep.mubr.bf16.mxu0 %v600_v36 }
  0x25   :  { %407 = vmatprep.mubr.bf16.mxu1 %v602_v37 }
  0x2b   :  { %359 = vmatmul.mubr.bf16.gmra.mrb[4].mxu0 %v604_v38 }
  0x2c   :  { %408 = vmatmul.mubr.bf16.gmra.mrb[4].mxu1 %v605_v39 }
  0xf6   :  { %v521_v40 = vpop.f32.mrb[0].mxu0 }
  0xf7   :  { %v549_v41 = vpop.f32.mrb[0].mxu1  ;;  %v522_v42 = vpop.f32.mrb[1].mxu0 }
  0xf8   :  { %v523_v43 = vadd.f32 %v522_v42, %v521_v40  ;;  %v550_v44 = vpop.f32.mrb[1].mxu1  ;;  %v524_v45 = vpop.f32.mrb[2].mxu0 }
  0xf9   :  { %v551_v46 = vadd.f32 %v550_v44, %v549_v41  ;;  %v552_v47 = vpop.f32.mrb[2].mxu1  ;;  %v525_v48 = vpop.f32.mrb[3].mxu0 }
  0xfa   :  { %v526_v49 = vadd.f32 %v525_v48, %v524_v45  ;;  %v553_v50 = vpop.f32.mrb[3].mxu1 }
  0xfb   :  { %v402_v51 = vadd.f32 %v551_v46, %v523_v43  ;;  %v554_v52 = vadd.f32 %v553_v50, %v552_v47 }
  0xfd   :  { %416 = vst [vmem:[%s763_s2] sm:$0xff] %v402_v51  ;;  %v405_v53 = vadd.f32 %v554_v52, %v526_v49  ;;  %v434_v55 = vmul.f32 %v402_v51, %v402_v51 }
  0xfe   :  { %v527_v54 = vpop.f32.mrb[4].mxu0 }
  0xff   :  { %417 = vst [vmem:[%s763_s2 + $0x8] sm:$0xff] %v405_v53  ;;  %v425_v56 = vadd.f32 %v405_v53, %v402_v51  ;;  %v435_v57 = vmul.f32 %v405_v53, %v405_v53  ;;  %v555_v58 = vpop.f32.mrb[4].mxu1  ;;  %v528_v59 = vpop.f32.mrb[5].mxu0 }
 0x100   :  { %v529_v60 = vadd.f32 %v528_v59, %v527_v54  ;;  %v556_v61 = vpop.f32.mrb[5].mxu1  ;;  %v530_v62 = vpop.f32.mrb[6].mxu0 }
 0x101   :  { %v438_v63 = vadd.f32 %v435_v57, %v434_v55  ;;  %v557_v0 = vadd.f32 %v556_v61, %v555_v58  ;;  %v558_v1 = vpop.f32.mrb[6].mxu1  ;;  %v531_v2 = vpop.f32.mrb[7].mxu0 }
 0x102   :  { %v532_v3 = vadd.f32 %v531_v2, %v530_v62  ;;  %v559_v4 = vpop.f32.mrb[7].mxu1 }
 0x103   :  { %v410_v5 = vadd.f32 %v557_v0, %v529_v60  ;;  %v560_v6 = vadd.f32 %v559_v4, %v558_v1 }
 0x105   :  { %418 = vst [vmem:[%s763_s2 + $0x10] sm:$0xff] %v410_v5  ;;  %v426_v7 = vadd.f32 %v425_v56, %v410_v5  ;;  %v436_v8 = vmul.f32 %v410_v5, %v410_v5  ;;  %v413_v9 = vadd.f32 %v560_v6, %v532_v3 }
 0x107   :  { %v439_v10 = vadd.f32 %v438_v63, %v436_v8  ;;  %419 = vst [vmem:[%s763_s2 + $0x18] sm:$0xff] %v413_v9  ;;  %v427_v11 = vadd.f32 %v426_v7, %v413_v9  ;;  %v437_v12 = vmul.f32 %v413_v9, %v413_v9 }
 0x109   :  { %v428_v13 = vrot.slane %v427_v11, 4  ;;  %v440_v14 = vadd.f32 %v439_v10, %v437_v12 }
 0x10b   :  { %v429_v15 = vadd.f32 %v428_v13, %v427_v11  ;;  %v441_v16 = vrot.slane %v440_v14, 4 }
 0x10d   :  { %v430_v18 = vrot.slane %v429_v15, 2  ;;  %v442_v19 = vadd.f32 %v441_v16, %v440_v14 }
 0x10f   :  { %v431_v20 = vadd.f32 %v430_v18, %v429_v15  ;;  %v443_v21 = vrot.slane %v442_v19, 2 }
 0x111   :  { %v432_v23 = vrot.slane %v431_v20, 1  ;;  %v444_v24 = vadd.f32 %v443_v21, %v442_v19 }
 0x113   :  { %v433_v25 = vadd.f32 %v432_v23, %v431_v20  ;;  %v445_v26 = vrot.slane %v444_v24, 1 }
 0x115   :  { %v446_v27 = vadd.f32 %v445_v26, %v444_v24  ;;  %v450_v28 = vsel %vm449_vm0, %v433_v25, 0.0 }
 0x117   :  { %v452_v29 = vsel %vm451_vm1, %v446_v27, 0.0 }
 0x118   :  { %v453_v30 = vadd.f32 %v452_v29, %v450_v28 }
 0x11a   :  { %456 = vst [vmem:[%s764_s3] sm:$0xff] %v453_v30 }

// kernel: _lambda_.20
= control target key start
LH: loop header
LB: loop body
LE: loop exit
PB: predicated region body
PF: predicated region fallthrough
CT: control target
= control target key end

     0   :  { %s104_s0 = inlined_call_operand.vmem [shape: f32[32,128], index: 0, kind: input, shape index: {}]   ;;  %s105_s1 = inlined_call_operand.vmem [shape: f32[1,128], index: 1, kind: input, shape index: {}]   ;;  %s106_s2 = inlined_call_operand.vmem [shape: f32[1,128], index: 2, kind: input, shape index: {}]   ;;  %s107_s3 = inlined_call_operand.vmem [shape: f32[32,128], index: 3, kind: output, shape index: {}]  }
   0x1   :  { %v14_v0 = vld [vmem:[%s104_s0] sm:$0xff]  ;;  %v15_v4 = vld [vmem:[%s104_s0 + $0x8] sm:$0xff]  ;;  %v16_v5 = vld [vmem:[%s104_s0 + $0x10] sm:$0xff] }
   0x2   :  { %v52_v1 = vld [vmem:[%s105_s1] ss:$0 sm:$0xff]  ;;  %v17_v6 = vld [vmem:[%s104_s0 + $0x18] sm:$0xff] }
   0x3   :  { %v53_v2 = vld [vmem:[%s106_s2] ss:$0 sm:$0xff]  ;;  %v25_v3 = vmul.f32 %v52_v1, %v14_v0  ;;  %v26_v7 = vmul.f32 %v52_v1, %v15_v4  ;;  %v27_v8 = vmul.f32 %v52_v1, %v16_v5  ;;  %v28_v9 = vmul.f32 %v52_v1, %v17_v6 }
   0x5   :  { %v36_v10 = vadd.f32 %v53_v2, %v25_v3  ;;  %v37_v11 = vadd.f32 %v53_v2, %v26_v7  ;;  %v38_v12 = vadd.f32 %v53_v2, %v27_v8  ;;  %v39_v13 = vadd.f32 %v53_v2, %v28_v9 }
   0x7   :  { %v40_v14 = vmax.f32 %v36_v10, 0.0  ;;  %v41_v15 = vmax.f32 %v37_v11, 0.0  ;;  %v42_v16 = vmax.f32 %v38_v12, 0.0  ;;  %v43_v17 = vmax.f32 %v39_v13, 0.0 }
   0x9   :  { %44 = vst [vmem:[%s107_s3] sm:$0xff] %v40_v14  ;;  %45 = vst [vmem:[%s107_s3 + $0x8] sm:$0xff] %v41_v15 }
   0xa   :  { %46 = vst [vmem:[%s107_s3 + $0x10] sm:$0xff] %v42_v16  ;;  %47 = vst [vmem:[%s107_s3 + $0x18] sm:$0xff] %v43_v17 }

// kernel: _lambda_.21
= control target key start
LH: loop header
LB: loop body
LE: loop exit
PB: predicated region body
PF: predicated region fallthrough
CT: control target
= control target key end

     0   :  { %v174_v27 = vlaneseq  ;;  %s308_s1 = inlined_call_operand.vmem [shape: bf16[128,128], index: 1, kind: input, shape index: {}]   ;;  %s309_s0 = inlined_call_operand.vmem [shape: bf16[32,128], index: 0, kind: input, shape index: {}]   ;;  %s310_s2 = inlined_call_operand.vmem [shape: f32[32,128], index: 2, kind: output, shape index: {0}]   ;;  %s311_s3 = inlined_call_operand.vmem [shape: f32[8,128], index: 3, kind: output, shape index: {1}]  }
   0x1   :  { %v233_v0 = vld [vmem:[%s308_s1] sm:$0xff]   ;;  %v234_v1 = vld [vmem:[%s308_s1 + $0x8] sm:$0xff]   ;;  %v235_v2 = vld [vmem:[%s308_s1 + $0x10] sm:$0xff]  }
   0x2   :  { %212 = vmatprep.subr.bf16.mxu0 %v233_v0  ;;  %v236_v3 = vld [vmem:[%s308_s1 + $0x18] sm:$0xff]   ;;  %v241_v4 = vld [vmem:[%s309_s0] sm:$0xff]   ;;  %v238_v6 = vld [vmem:[%s308_s1 + $0x28] sm:$0xff]   ;;  %v175_v32 = vshrl.u32 %v174_v27, 7 }
   0x3   :  { %213 = vmatpush3.bf16.msra.mxu0 %v233_v0  ;;  %228 = vmatprep.mubr.bf16.mxu0 %v241_v4  ;;  %v237_v5 = vld [vmem:[%s308_s1 + $0x20] sm:$0xff]   ;;  %v239_v7 = vld [vmem:[%s308_s1 + $0x30] sm:$0xff]   ;;  %v240_v8 = vld [vmem:[%s308_s1 + $0x38] sm:$0xff]  }
   0x4   :  { %214 = vmatprep.subr.bf16.mxu0 %v234_v1  ;;  %v242_v9 = vld [vmem:[%s309_s0 + $0x8] sm:$0xff]   ;;  %vm176_vm0 = vcmp.eq.s32.totalorder %v175_v32, 0  ;;  %vm178_vm1 = vcmp.eq.s32.totalorder %v175_v32, 1 }
   0x7   :  { %215 = vmatpush3.bf16.msra.mxu0 %v234_v1 }
   0x8   :  { %216 = vmatprep.subr.bf16.mxu0 %v235_v2 }
   0xb   :  { %217 = vmatpush3.bf16.msra.mxu0 %v235_v2 }
   0xc   :  { %218 = vmatprep.subr.bf16.mxu0 %v236_v3 }
   0xf   :  { %219 = vmatpush3.bf16.msra.mxu0 %v236_v3 }
  0x10   :  { %220 = vmatprep.subr.bf16.mxu0 %v237_v5 }
  0x13   :  { %221 = vmatpush3.bf16.msra.mxu0 %v237_v5 }
  0x14   :  { %222 = vmatprep.subr.bf16.mxu0 %v238_v6 }
  0x17   :  { %223 = vmatpush3.bf16.msra.mxu0 %v238_v6 }
  0x18   :  { %224 = vmatprep.subr.bf16.mxu0 %v239_v7 }
  0x1b   :  { %225 = vmatpush3.bf16.msra.mxu0 %v239_v7 }
  0x1c   :  { %226 = vmatprep.subr.bf16.mxu0 %v240_v8 }
  0x1f   :  { %227 = vmatpush3.bf16.msra.mxu0 %v240_v8 }
  0x22   :  { %229 = vmatmul.mubr.bf16.vlgmr.msra.gmra.mrb[0].mxu0 %v242_v9 }
  0xf5   :  { %v230_v10 = vpop.f32.mrb[0].mxu0 }
  0xf6   :  { %145 = vst [vmem:[%s310_s2 + $0x10] sm:$0xff] %v230_v10  ;;  %v128_v11 = vpop.f32.mrb[1].mxu0  ;;  %v163_v17 = vmul.f32 %v230_v10, %v230_v10 }
  0xf7   :  { %143 = vst [vmem:[%s310_s2] sm:$0xff] %v128_v11  ;;  %v231_v12 = vpop.f32.mrb[2].mxu0  ;;  %v161_v14 = vmul.f32 %v128_v11, %v128_v11 }
  0xf8   :  { %146 = vst [vmem:[%s310_s2 + $0x18] sm:$0xff] %v231_v12  ;;  %v131_v13 = vpop.f32.mrb[3].mxu0  ;;  %v164_v20 = vmul.f32 %v231_v12, %v231_v12 }
  0xf9   :  { %144 = vst [vmem:[%s310_s2 + $0x8] sm:$0xff] %v131_v13  ;;  %v152_v15 = vadd.f32 %v131_v13, %v128_v11  ;;  %v162_v16 = vmul.f32 %v131_v13, %v131_v13 }
  0xfb   :  { %v153_v18 = vadd.f32 %v230_v10, %v152_v15  ;;  %v165_v19 = vadd.f32 %v162_v16, %v161_v14 }
  0xfd   :  { %v154_v21 = vadd.f32 %v231_v12, %v153_v18  ;;  %v166_v22 = vadd.f32 %v165_v19, %v163_v17 }
  0xff   :  { %v155_v23 = vrot.slane %v154_v21, 4  ;;  %v167_v24 = vadd.f32 %v166_v22, %v164_v20 }
 0x101   :  { %v156_v25 = vadd.f32 %v155_v23, %v154_v21  ;;  %v168_v26 = vrot.slane %v167_v24, 4 }
 0x103   :  { %v157_v28 = vrot.slane %v156_v25, 2  ;;  %v169_v29 = vadd.f32 %v168_v26, %v167_v24 }
 0x105   :  { %v158_v30 = vadd.f32 %v157_v28, %v156_v25  ;;  %v170_v31 = vrot.slane %v169_v29, 2 }
 0x107   :  { %v159_v33 = vrot.slane %v158_v30, 1  ;;  %v171_v34 = vadd.f32 %v170_v31, %v169_v29 }
 0x109   :  { %v160_v35 = vadd.f32 %v159_v33, %v158_v30  ;;  %v172_v36 = vrot.slane %v171_v34, 1 }
 0x10b   :  { %v173_v37 = vadd.f32 %v172_v36, %v171_v34  ;;  %v177_v38 = vsel %vm176_vm0, %v160_v35, 0.0 }
 0x10d   :  { %v179_v39 = vsel %vm178_vm1, %v173_v37, 0.0 }
 0x10e   :  { %v180_v40 = vadd.f32 %v179_v39, %v177_v38 }
 0x110   :  { %183 = vst [vmem:[%s311_s3] sm:$0xff] %v180_v40 }

// kernel: _lambda_.25
= control target key start
LH: loop header
LB: loop body
LE: loop exit
PB: predicated region body
PF: predicated region fallthrough
CT: control target
= control target key end

     0   :  { %s254_s0 = inlined_call_operand.vmem [shape: f32[128,128], index: 0, kind: input, shape index: {}]   ;;  %s255_s1 = inlined_call_operand.vmem [shape: f32[1,128], index: 1, kind: input, shape index: {}]   ;;  %s256_s2 = inlined_call_operand.vmem [shape: f32[1,128], index: 2, kind: input, shape index: {}]   ;;  %s257_s3 = inlined_call_operand.vmem [shape: f32[128,128], index: 3, kind: output, shape index: {}]  }
   0x1   :  { %v14_v0 = vld [vmem:[%s254_s0] sm:$0xff]  ;;  %v15_v4 = vld [vmem:[%s254_s0 + $0x8] sm:$0xff]  ;;  %v16_v5 = vld [vmem:[%s254_s0 + $0x10] sm:$0xff] }
   0x2   :  { %v112_v1 = vld [vmem:[%s255_s1] ss:$0 sm:$0xff]  ;;  %v17_v6 = vld [vmem:[%s254_s0 + $0x18] sm:$0xff]  ;;  %v19_v11 = vld [vmem:[%s254_s0 + $0x28] sm:$0xff] }
   0x3   :  { %v143_v2 = vld [vmem:[%s256_s2] ss:$0 sm:$0xff]  ;;  %v37_v3 = vmul.f32 %v112_v1, %v14_v0  ;;  %v38_v7 = vmul.f32 %v112_v1, %v15_v4  ;;  %v39_v8 = vmul.f32 %v112_v1, %v16_v5  ;;  %v40_v9 = vmul.f32 %v112_v1, %v17_v6  ;;  %v20_v12 = vld [vmem:[%s254_s0 + $0x30] sm:$0xff]  ;;  %v21_v17 = vld [vmem:[%s254_s0 + $0x38] sm:$0xff] }
   0x4   :  { %v18_v10 = vld [vmem:[%s254_s0 + $0x20] sm:$0xff]  ;;  %v42_v15 = vmul.f32 %v112_v1, %v19_v11  ;;  %v43_v16 = vmul.f32 %v112_v1, %v20_v12  ;;  %v44_v21 = vmul.f32 %v112_v1, %v21_v17  ;;  %v23_v27 = vld [vmem:[%s254_s0 + $0x48] sm:$0xff]  ;;  %v24_v28 = vld [vmem:[%s254_s0 + $0x50] sm:$0xff] }
   0x5   :  { %v60_v13 = vadd.f32 %v143_v2, %v37_v3  ;;  %v41_v14 = vmul.f32 %v112_v1, %v18_v10  ;;  %v61_v18 = vadd.f32 %v143_v2, %v38_v7  ;;  %v62_v19 = vadd.f32 %v143_v2, %v39_v8  ;;  %v22_v22 = vld [vmem:[%s254_s0 + $0x40] sm:$0xff]  ;;  %v25_v29 = vld [vmem:[%s254_s0 + $0x58] sm:$0xff]  ;;  %v27_v35 = vld [vmem:[%s254_s0 + $0x68] sm:$0xff] }
   0x6   :  { %v63_v20 = vadd.f32 %v143_v2, %v40_v9  ;;  %v65_v25 = vadd.f32 %v143_v2, %v42_v15  ;;  %v66_v26 = vadd.f32 %v143_v2, %v43_v16  ;;  %v67_v33 = vadd.f32 %v143_v2, %v44_v21  ;;  %v26_v34 = vld [vmem:[%s254_s0 + $0x60] sm:$0xff]  ;;  %v28_v36 = vld [vmem:[%s254_s0 + $0x70] sm:$0xff]  ;;  %v29_v41 = vld [vmem:[%s254_s0 + $0x78] sm:$0xff] }
   0x7   :  { %v76_v23 = vmax.f32 %v60_v13, 0.0  ;;  %v64_v24 = vadd.f32 %v143_v2, %v41_v14  ;;  %v77_v30 = vmax.f32 %v61_v18, 0.0  ;;  %v78_v31 = vmax.f32 %v62_v19, 0.0 }
   0x8   :  { %v79_v32 = vmax.f32 %v63_v20, 0.0  ;;  %v81_v38 = vmax.f32 %v65_v25, 0.0  ;;  %v82_v39 = vmax.f32 %v66_v26, 0.0  ;;  %v45_v40 = vmul.f32 %v112_v1, %v22_v22 }
   0x9   :  { %92 = vst [vmem:[%s257_s3] sm:$0xff] %v76_v23  ;;  %v80_v37 = vmax.f32 %v64_v24, 0.0  ;;  %93 = vst [vmem:[%s257_s3 + $0x8] sm:$0xff] %v77_v30  ;;  %v83_v42 = vmax.f32 %v67_v33, 0.0  ;;  %v46_v43 = vmul.f32 %v112_v1, %v23_v27  ;;  %v47_v44 = vmul.f32 %v112_v1, %v24_v28 }
   0xa   :  { %94 = vst [vmem:[%s257_s3 + $0x10] sm:$0xff] %v78_v31  ;;  %95 = vst [vmem:[%s257_s3 + $0x18] sm:$0xff] %v79_v32  ;;  %v48_v45 = vmul.f32 %v112_v1, %v25_v29  ;;  %v68_v46 = vadd.f32 %v143_v2, %v45_v40  ;;  %v49_v47 = vmul.f32 %v112_v1, %v26_v34 }
   0xb   :  { %96 = vst [vmem:[%s257_s3 + $0x20] sm:$0xff] %v80_v37  ;;  %97 = vst [vmem:[%s257_s3 + $0x28] sm:$0xff] %v81_v38  ;;  %v50_v48 = vmul.f32 %v112_v1, %v27_v35  ;;  %v51_v49 = vmul.f32 %v112_v1, %v28_v36  ;;  %v69_v50 = vadd.f32 %v143_v2, %v46_v43 }
   0xc   :  { %98 = vst [vmem:[%s257_s3 + $0x30] sm:$0xff] %v82_v39  ;;  %99 = vst [vmem:[%s257_s3 + $0x38] sm:$0xff] %v83_v42  ;;  %v70_v51 = vadd.f32 %v143_v2, %v47_v44  ;;  %v71_v52 = vadd.f32 %v143_v2, %v48_v45  ;;  %v52_v53 = vmul.f32 %v112_v1, %v29_v41  ;;  %v84_v54 = vmax.f32 %v68_v46, 0.0 }
   0xd   :  { %v72_v55 = vadd.f32 %v143_v2, %v49_v47  ;;  %v73_v56 = vadd.f32 %v143_v2, %v50_v48  ;;  %v74_v57 = vadd.f32 %v143_v2, %v51_v49  ;;  %v85_v58 = vmax.f32 %v69_v50, 0.0 }
   0xe   :  { %v86_v59 = vmax.f32 %v70_v51, 0.0  ;;  %v87_v60 = vmax.f32 %v71_v52, 0.0  ;;  %v75_v61 = vadd.f32 %v143_v2, %v52_v53  ;;  %100 = vst [vmem:[%s257_s3 + $0x40] sm:$0xff] %v84_v54 }
   0xf   :  { %v88_v62 = vmax.f32 %v72_v55, 0.0  ;;  %v89_v63 = vmax.f32 %v73_v56, 0.0  ;;  %v90_v0 = vmax.f32 %v74_v57, 0.0  ;;  %101 = vst [vmem:[%s257_s3 + $0x48] sm:$0xff] %v85_v58 }
  0x10   :  { %102 = vst [vmem:[%s257_s3 + $0x50] sm:$0xff] %v86_v59  ;;  %103 = vst [vmem:[%s257_s3 + $0x58] sm:$0xff] %v87_v60  ;;  %v91_v1 = vmax.f32 %v75_v61, 0.0 }
  0x11   :  { %104 = vst [vmem:[%s257_s3 + $0x60] sm:$0xff] %v88_v62  ;;  %105 = vst [vmem:[%s257_s3 + $0x68] sm:$0xff] %v89_v63 }
  0x12   :  { %106 = vst [vmem:[%s257_s3 + $0x70] sm:$0xff] %v90_v0  ;;  %107 = vst [vmem:[%s257_s3 + $0x78] sm:$0xff] %v91_v1 }

// kernel: _lambda_.26
= control target key start
LH: loop header
LB: loop body
LE: loop exit
PB: predicated region body
PF: predicated region fallthrough
CT: control target
= control target key end

     0   :  { %s512_s1 = inlined_call_operand.vmem [shape: bf16[128,128], index: 1, kind: input, shape index: {}]   ;;  %s513_s0 = inlined_call_operand.vmem [shape: bf16[128,128], index: 0, kind: input, shape index: {}]   ;;  %s514_s2 = inlined_call_operand.vmem [shape: f32[128,128], index: 2, kind: output, shape index: {}]  }
   0x1   :  { %v353_v0 = vld [vmem:[%s512_s1] sm:$0xff]   ;;  %v354_v1 = vld [vmem:[%s512_s1 + $0x8] sm:$0xff]   ;;  %v355_v2 = vld [vmem:[%s512_s1 + $0x10] sm:$0xff]  }
   0x2   :  { %305 = vmatprep.subr.bf16.mxu0 %v353_v0  ;;  %337 = vmatprep.subr.bf16.mxu1 %v353_v0  ;;  %v356_v3 = vld [vmem:[%s512_s1 + $0x18] sm:$0xff]   ;;  %v361_v4 = vld [vmem:[%s513_s0] sm:$0xff]   ;;  %v358_v7 = vld [vmem:[%s512_s1 + $0x28] sm:$0xff]  }
   0x3   :  { %306 = vmatpush3.bf16.msra.mxu0 %v353_v0  ;;  %345 = vmatpush3.bf16.msra.mxu1 %v353_v0  ;;  %v362_v5 = vld [vmem:[%s513_s0 + $0x20] sm:$0xff]   ;;  %v359_v8 = vld [vmem:[%s512_s1 + $0x30] sm:$0xff]   ;;  %v360_v9 = vld [vmem:[%s512_s1 + $0x38] sm:$0xff]  }
   0x4   :  { %307 = vmatprep.subr.bf16.mxu0 %v354_v1  ;;  %338 = vmatprep.subr.bf16.mxu1 %v354_v1  ;;  %v357_v6 = vld [vmem:[%s512_s1 + $0x20] sm:$0xff]   ;;  %v363_v10 = vld [vmem:[%s513_s0 + $0x8] sm:$0xff]   ;;  %v365_v12 = vld [vmem:[%s513_s0 + $0x10] sm:$0xff]  }
   0x5   :  { %321 = vmatprep.mubr.bf16.mxu0 %v361_v4  ;;  %329 = vmatprep.mubr.bf16.mxu1 %v362_v5  ;;  %v364_v11 = vld [vmem:[%s513_s0 + $0x28] sm:$0xff]   ;;  %v366_v13 = vld [vmem:[%s513_s0 + $0x30] sm:$0xff]   ;;  %v367_v14 = vld [vmem:[%s513_s0 + $0x18] sm:$0xff]  }
   0x6   :  { %v368_v15 = vld [vmem:[%s513_s0 + $0x38] sm:$0xff]  }
   0x7   :  { %308 = vmatpush3.bf16.msra.mxu0 %v354_v1  ;;  %346 = vmatpush3.bf16.msra.mxu1 %v354_v1 }
   0x8   :  { %309 = vmatprep.subr.bf16.mxu0 %v355_v2  ;;  %339 = vmatprep.subr.bf16.mxu1 %v355_v2 }
   0xb   :  { %310 = vmatpush3.bf16.msra.mxu0 %v355_v2  ;;  %347 = vmatpush3.bf16.msra.mxu1 %v355_v2 }
   0xc   :  { %311 = vmatprep.subr.bf16.mxu0 %v356_v3  ;;  %340 = vmatprep.subr.bf16.mxu1 %v356_v3 }
   0xf   :  { %312 = vmatpush3.bf16.msra.mxu0 %v356_v3  ;;  %348 = vmatpush3.bf16.msra.mxu1 %v356_v3 }
  0x10   :  { %313 = vmatprep.subr.bf16.mxu0 %v357_v6  ;;  %341 = vmatprep.subr.bf16.mxu1 %v357_v6 }
  0x13   :  { %314 = vmatpush3.bf16.msra.mxu0 %v357_v6  ;;  %349 = vmatpush3.bf16.msra.mxu1 %v357_v6 }
  0x14   :  { %315 = vmatprep.subr.bf16.mxu0 %v358_v7  ;;  %342 = vmatprep.subr.bf16.mxu1 %v358_v7 }
  0x17   :  { %316 = vmatpush3.bf16.msra.mxu0 %v358_v7  ;;  %350 = vmatpush3.bf16.msra.mxu1 %v358_v7 }
  0x18   :  { %317 = vmatprep.subr.bf16.mxu0 %v359_v8  ;;  %343 = vmatprep.subr.bf16.mxu1 %v359_v8 }
  0x1b   :  { %318 = vmatpush3.bf16.msra.mxu0 %v359_v8  ;;  %351 = vmatpush3.bf16.msra.mxu1 %v359_v8 }
  0x1c   :  { %319 = vmatprep.subr.bf16.mxu0 %v360_v9  ;;  %344 = vmatprep.subr.bf16.mxu1 %v360_v9 }
  0x1f   :  { %320 = vmatpush3.bf16.msra.mxu0 %v360_v9  ;;  %352 = vmatpush3.bf16.msra.mxu1 %v360_v9 }
  0x22   :  { %322 = vmatmul.mubr.bf16.vlgmr.msra.gmra.mrb[0].mxu0 %v363_v10  ;;  %330 = vmatmul.mubr.bf16.vlgmr.msra.gmra.mrb[0].mxu1 %v364_v11 }
  0x23   :  { %325 = vmatprep.mubr.bf16.mxu0 %v365_v12  ;;  %333 = vmatprep.mubr.bf16.mxu1 %v366_v13 }
  0x2a   :  { %326 = vmatmul.mubr.bf16.gmra.mrb[4].mxu0 %v367_v14  ;;  %334 = vmatmul.mubr.bf16.gmra.mrb[4].mxu1 %v368_v15 }
  0xf5   :  { %v323_v16 = vpop.f32.mrb[0].mxu0  ;;  %v331_v17 = vpop.f32.mrb[0].mxu1 }
  0xf6   :  { %369 = vtanh.f32 %v323_v16  ;;  %v174_v18 = vpop.f32.mrb[1].mxu0  ;;  %v206_v19 = vpop.f32.mrb[1].mxu1 }
  0xf7   :  { %371 = vtanh.f32 %v331_v17  ;;  %v324_v20 = vpop.f32.mrb[2].mxu0  ;;  %v332_v21 = vpop.f32.mrb[2].mxu1 }
  0xf8   :  { %373 = vtanh.f32 %v174_v18  ;;  %v177_v22 = vpop.f32.mrb[3].mxu0  ;;  %v209_v23 = vpop.f32.mrb[3].mxu1 }
  0xf9   :  { %375 = vtanh.f32 %v206_v19 }
  0xfa   :  { %377 = vtanh.f32 %v324_v20 }
  0xfb   :  { %379 = vtanh.f32 %v332_v21 }
  0xfc   :  { %381 = vtanh.f32 %v177_v22 }
  0xfd   :  { %383 = vtanh.f32 %v209_v23  ;;  %v327_v24 = vpop.f32.mrb[4].mxu0  ;;  %v335_v25 = vpop.f32.mrb[4].mxu1 }
  0xfe   :  { %385 = vtanh.f32 %v327_v24  ;;  %v190_v26 = vpop.f32.mrb[5].mxu0  ;;  %v222_v27 = vpop.f32.mrb[5].mxu1 }
  0xff   :  { %387 = vtanh.f32 %v335_v25  ;;  %v328_v28 = vpop.f32.mrb[6].mxu0  ;;  %v336_v29 = vpop.f32.mrb[6].mxu1 }
 0x100   :  { %v370_v30 = vpop.eup %369  ;;  %389 = vtanh.f32 %v190_v26  ;;  %v193_v31 = vpop.f32.mrb[7].mxu0 }
 0x101   :  { %v225_v32 = vpop.f32.mrb[7].mxu1  ;;  %v372_v33 = vpop.eup %371  ;;  %255 = vst [vmem:[%s514_s2 + $0x10] sm:$0xff] %v370_v30  ;;  %391 = vtanh.f32 %v222_v27 }
 0x102   :  { %v374_v34 = vpop.eup %373  ;;  %263 = vst [vmem:[%s514_s2 + $0x50] sm:$0xff] %v372_v33  ;;  %393 = vtanh.f32 %v328_v28 }
 0x103   :  { %v376_v35 = vpop.eup %375  ;;  %253 = vst [vmem:[%s514_s2] sm:$0xff] %v374_v34  ;;  %395 = vtanh.f32 %v336_v29 }
 0x104   :  { %v378_v36 = vpop.eup %377  ;;  %261 = vst [vmem:[%s514_s2 + $0x40] sm:$0xff] %v376_v35  ;;  %397 = vtanh.f32 %v193_v31 }
 0x105   :  { %v380_v37 = vpop.eup %379  ;;  %256 = vst [vmem:[%s514_s2 + $0x18] sm:$0xff] %v378_v36  ;;  %399 = vtanh.f32 %v225_v32 }
 0x106   :  { %v382_v38 = vpop.eup %381  ;;  %264 = vst [vmem:[%s514_s2 + $0x58] sm:$0xff] %v380_v37 }
 0x107   :  { %v384_v39 = vpop.eup %383  ;;  %254 = vst [vmem:[%s514_s2 + $0x8] sm:$0xff] %v382_v38 }
 0x108   :  { %v386_v40 = vpop.eup %385  ;;  %262 = vst [vmem:[%s514_s2 + $0x48] sm:$0xff] %v384_v39 }
 0x109   :  { %v388_v41 = vpop.eup %387  ;;  %259 = vst [vmem:[%s514_s2 + $0x30] sm:$0xff] %v386_v40 }
 0x10a   :  { %v390_v42 = vpop.eup %389  ;;  %267 = vst [vmem:[%s514_s2 + $0x70] sm:$0xff] %v388_v41 }
 0x10b   :  { %v392_v43 = vpop.eup %391  ;;  %257 = vst [vmem:[%s514_s2 + $0x20] sm:$0xff] %v390_v42 }
 0x10c   :  { %v394_v44 = vpop.eup %393  ;;  %265 = vst [vmem:[%s514_s2 + $0x60] sm:$0xff] %v392_v43 }
 0x10d   :  { %v396_v45 = vpop.eup %395  ;;  %260 = vst [vmem:[%s514_s2 + $0x38] sm:$0xff] %v394_v44 }
 0x10e   :  { %v398_v46 = vpop.eup %397  ;;  %268 = vst [vmem:[%s514_s2 + $0x78] sm:$0xff] %v396_v45 }
 0x10f   :  { %v400_v47 = vpop.eup %399  ;;  %258 = vst [vmem:[%s514_s2 + $0x28] sm:$0xff] %v398_v46 }
 0x110   :  { %266 = vst [vmem:[%s514_s2 + $0x68] sm:$0xff] %v400_v47 }

</bundles_post_ra>
